<compile_context>
chip_gen: v6e
topology: v6e:2x2x1
jax: 0.10.0
libtpu: 0.0.40
codegen_flags: <defaults>
</compile_context>

<pallas_src>
import functools

import jax
import jax.numpy as jnp
import numpy as np
from jax.experimental import pallas as pl
from jax.experimental.pallas import tpu as pltpu


def _round_up(x, m):
    return ((x + m - 1) // m) * m


# ----------------------------------------------------------------------------
# Pallas kernel: hoisted x-path projection  (T*BHW, KKC) @ (KKC, 4*hid) + b
# One MXU-saturating GEMM over all timesteps, tiled over M (parallel).
# ----------------------------------------------------------------------------
def _xproj_kernel(p_ref, w_ref, b_ref, o_ref):
    o_ref[...] = (jnp.dot(p_ref[...], w_ref[...],
                          preferred_element_type=jnp.float32) + b_ref[...])


def x_projection(patches, wx, b, *, tm=256):
    """patches: (M, K) bf16, wx: (K, N) bf16, b: (1, N) f32 -> (M, N) f32."""
    M, K = patches.shape
    N = wx.shape[1]
    Mp = _round_up(M, tm)
    if Mp != M:
        patches = jnp.pad(patches, ((0, Mp - M), (0, 0)))
    out = pl.pallas_call(
        _xproj_kernel,
        out_shape=jax.ShapeDtypeStruct((Mp, N), jnp.float32),
        grid=(Mp // tm,),
        in_specs=[
            pl.BlockSpec((tm, K), lambda i: (i, 0)),
            pl.BlockSpec((K, N), lambda i: (0, 0)),
            pl.BlockSpec((1, N), lambda i: (0, 0)),
        ],
        out_specs=pl.BlockSpec((tm, N), lambda i: (i, 0)),
        compiler_params=pltpu.CompilerParams(
            dimension_semantics=("parallel",)),
    )(patches, wx, b)
    return out[:M]


# ----------------------------------------------------------------------------
# Pallas kernel: one fused ConvLSTM *layer* recurrence (all T steps, grid=(T,))
# Transposed layout: everything is (channels, B*H*W) with B*H*W on lanes.
# ----------------------------------------------------------------------------
def _convlstm_layer_kernel(xg_ref, whT_ref, mask_ref, out_ref, h_ref, c_ref,
                           *, hid, shifts, last_only):
    t = pl.program_id(0)

    @pl.when(t == 0)
    def _():
        h_ref[...] = jnp.zeros_like(h_ref)
        c_ref[...] = jnp.zeros_like(c_ref)

    h = h_ref[...]                      # (hid, L) f32, lane-dense
    masks = mask_ref[...]               # (k*k, L) f32 tap-validity masks

    # Build the h conv-patch with lane rolls (XLU) + masks (VPU), then ONE
    # matmul with K = k*k*hid instead of k*k tiny K=hid matmuls.
    taps = []
    for j, s in enumerate(shifts):
        tap = h if s == 0 else pltpu.roll(h, shift=s, axis=1)
        taps.append(masks[j:j + 1, :] * tap)
    patch = jnp.concatenate(taps, axis=0).astype(jnp.bfloat16)   # (k*k*hid, L)

    # acc = (x conv + bias) [precomputed, streamed] + h conv
    acc = xg_ref[0] + jnp.dot(whT_ref[...], patch,
                              preferred_element_type=jnp.float32)  # (4*hid, L)

    gi = jax.nn.sigmoid(acc[0 * hid:1 * hid])
    gf = jax.nn.sigmoid(acc[1 * hid:2 * hid])
    go = jax.nn.sigmoid(acc[2 * hid:3 * hid])
    gg = jnp.tanh(acc[3 * hid:4 * hid])

    c_new = gf * c_ref[...] + gi * gg
    h_new = go * jnp.tanh(c_new)
    c_ref[...] = c_new
    h_ref[...] = h_new

    if last_only:
        # Only the final timestep feeds the MLP head.
        @pl.when(t == pl.num_programs(0) - 1)
        def _():
            out_ref[...] = h_new.astype(out_ref.dtype)
    else:
        out_ref[0] = h_new.astype(out_ref.dtype)     # lane-dense bf16 write


def convlstm_layer(xg, whT, masks, shifts, *, T, hid, L, last_only):
    """xg: (T, 4*hid, L) f32  precomputed x conv + bias (transposed, padded)
       whT: (4*hid, k*k*hid) bf16, masks: (k*k, L) f32, shifts: static tuple."""
    kk = len(shifts)
    kernel = functools.partial(_convlstm_layer_kernel, hid=hid,
                               shifts=tuple(shifts), last_only=last_only)
    if last_only:
        out_shape = jax.ShapeDtypeStruct((hid, L), jnp.bfloat16)
        out_spec = pl.BlockSpec((hid, L), lambda t: (0, 0))
    else:
        out_shape = jax.ShapeDtypeStruct((T, hid, L), jnp.bfloat16)
        out_spec = pl.BlockSpec((1, hid, L), lambda t: (t, 0, 0))
    return pl.pallas_call(
        kernel,
        out_shape=out_shape,
        grid_spec=pltpu.PrefetchScalarGridSpec(
            num_scalar_prefetch=0,
            grid=(T,),
            in_specs=[
                pl.BlockSpec((1, 4 * hid, L), lambda t: (t, 0, 0)),
                pl.BlockSpec((4 * hid, kk * hid), lambda t: (0, 0)),
                pl.BlockSpec((kk, L), lambda t: (0, 0)),
            ],
            out_specs=out_spec,
            scratch_shapes=[
                pltpu.VMEM((hid, L), jnp.float32),   # h_{t-1}
                pltpu.VMEM((hid, L), jnp.float32),   # c_{t-1}
            ],
        ),
        compiler_params=pltpu.CompilerParams(
            dimension_semantics=("arbitrary",)),     # recurrence over t
    )(xg, whT, masks)


# ----------------------------------------------------------------------------
# Pallas kernel: MLP head.  First Linear K-tiled over the grid with an f32
# accumulator; remaining small Linears fused in the last-step epilogue.
# ----------------------------------------------------------------------------
def _mlp_head_kernel(x_ref, *refs, n_linear):
    o_ref, acc_ref = refs[-2], refs[-1]
    wbs = refs[:-2]
    kk = pl.program_id(0)

    @pl.when(kk == 0)
    def _():
        acc_ref[...] = jnp.zeros_like(acc_ref)

    acc_ref[...] += jnp.dot(x_ref[...], wbs[0][...],
                            preferred_element_type=jnp.float32)

    @pl.when(kk == pl.num_programs(0) - 1)
    def _():
        y = acc_ref[...] + wbs[1][...]
        for i in range(1, n_linear):
            y = jnp.maximum(y, 0.0)      # ReLU (Dropout == identity in eval)
            y = jnp.dot(y.astype(jnp.bfloat16), wbs[2 * i][...],
                        preferred_element_type=jnp.float32) + wbs[2 * i + 1][...]
        o_ref[...] = y


def mlp_head(feat, weights, biases, *, tk=256):
    B, D0 = feat.shape
    Dout = weights[-1].shape[1]
    n_linear = len(weights)
    D0p = _round_up(D0, tk)
    if D0p != D0:
        feat = jnp.pad(feat, ((0, 0), (0, D0p - D0)))
        weights = [jnp.pad(weights[0], ((0, D0p - D0), (0, 0)))] + list(weights[1:])
    N0 = weights[0].shape[1]

    args = [feat, weights[0], biases[0]]
    in_specs = [
        pl.BlockSpec((B, tk), lambda kk: (0, kk)),
        pl.BlockSpec((tk, N0), lambda kk: (kk, 0)),
        pl.BlockSpec(biases[0].shape, lambda kk: (0, 0)),
    ]
    for w, b in zip(weights[1:], biases[1:]):
        args.extend([w, b])
        in_specs.append(pl.BlockSpec(w.shape, lambda kk: (0, 0)))
        in_specs.append(pl.BlockSpec(b.shape, lambda kk: (0, 0)))

    kernel = functools.partial(_mlp_head_kernel, n_linear=n_linear)
    return pl.pallas_call(
        kernel,
        out_shape=jax.ShapeDtypeStruct((B, Dout), jnp.float32),
        grid_spec=pltpu.PrefetchScalarGridSpec(
            num_scalar_prefetch=0,
            grid=(D0p // tk,),
            in_specs=in_specs,
            out_specs=pl.BlockSpec((B, Dout), lambda kk: (0, 0)),
            scratch_shapes=[pltpu.VMEM((B, N0), jnp.float32)],
        ),
        compiler_params=pltpu.CompilerParams(
            dimension_semantics=("arbitrary",)),
    )(*args)


# ----------------------------------------------------------------------------
# XLA-side helpers (run once per layer, outside the recurrent kernel).
# ----------------------------------------------------------------------------
def _im2col_seq(seq, k):
    """seq: (T, B, H, W, C) -> bf16 patches (T, B*H*W, k*k*C)."""
    T, B, H, W, C = seq.shape
    p = k // 2
    xpad = jnp.pad(seq, ((0, 0), (0, 0), (p, p), (p, p), (0, 0)))
    taps = [xpad[:, :, kh:kh + H, kw:kw + W, :]
            for kh in range(k) for kw in range(k)]
    patches = jnp.stack(taps, axis=-2)                 # (T,B,H,W,k*k,C)
    return patches.reshape(T, B * H * W, k * k * C).astype(jnp.bfloat16)


def _tap_masks_and_shifts(B, H, W, k, L):
    """Static lane-shift amounts and validity masks for the h conv taps."""
    p = k // 2
    BHW = B * H * W
    idx = np.arange(L)
    xs = idx % W
    ys = (idx // W) % H
    masks, shifts = [], []
    for kh in range(k):
        for kw in range(k):
            dy, dx = kh - p, kw - p
            valid = ((ys + dy >= 0) & (ys + dy < H) &
                     (xs + dx >= 0) & (xs + dx < W) & (idx < BHW))
            masks.append(valid.astype(np.float32))
            shifts.append(int((-(dy * W + dx)) % L))
    return jnp.asarray(np.stack(masks)), tuple(shifts)


# ----------------------------------------------------------------------------
# Parameter init (deterministic, synthetic) + full forward.
# ----------------------------------------------------------------------------
def init_params(key, kernel_size, input_dim, hidden_dim, num_layers,
                linear_dim, H, W, output_dim):
    params = {"cells": [], "linears": []}
    cin = input_dim
    for _ in range(num_layers):
        key, kw_key = jax.random.split(key)
        C = cin + hidden_dim
        scale = 1.0 / (kernel_size * kernel_size * C) ** 0.5
        w = jax.random.normal(
            kw_key, (kernel_size, kernel_size, C, 4 * hidden_dim),
            jnp.float32) * scale
        b = jnp.zeros((1, 4 * hidden_dim), jnp.float32)
        params["cells"].append((w, b))
        cin = hidden_dim

    # linears[0] rows are in PyTorch (C,H,W) flatten order, which is exactly
    # the order the transposed-layout kernel produces -> no permutation needed.
    dims = [hidden_dim * H * W] + list(linear_dim) + [output_dim]
    for i in range(len(dims) - 1):
        key, k1, k2 = jax.random.split(key, 3)
        w = jax.random.normal(k1, (dims[i], dims[i + 1]), jnp.float32) \
            * (1.0 / dims[i] ** 0.5)
        b = jax.random.normal(k2, (1, dims[i + 1]), jnp.float32) * 0.01
        params["linears"].append((w, b))
    return params


def predic_model_forward(params, x_btchw):
    """x_btchw: (B, T, C, H, W) -- PyTorch batch_first ConvLSTM input layout."""
    x = x_btchw.astype(jnp.float32)
    B, T, _, H, W = x.shape
    seq = jnp.transpose(x, (1, 0, 3, 4, 2))            # (T, B, H, W, C)

    hid = params["cells"][0][0].shape[-1] // 4
    k = params["cells"][0][0].shape[0]
    # TODO(synk): 'same' padding assumes odd kernel_size (matches PyTorch only then).

    BHW = B * H * W
    L = _round_up(BHW, 128)                            # lane-dense width
    masks, shifts = _tap_masks_and_shifts(B, H, W, k, L)

    n_layers = len(params["cells"])
    out = None
    for li, (w, b) in enumerate(params["cells"]):
        cin = w.shape[2] - hid
        kkc = k * k * cin
        wx = w[:, :, :cin, :].reshape(kkc, 4 * hid).astype(jnp.bfloat16)
        whT = (w[:, :, cin:, :].reshape(k * k * hid, 4 * hid).T
               .astype(jnp.bfloat16))

        # Hoisted non-recurrent x-path: one big GEMM over all T timesteps,
        # bias folded in.  Result is re-laid out (transposed) so B*H*W is the
        # lane axis inside the recurrent kernel.
        patches = _im2col_seq(seq, k).reshape(T * BHW, kkc)
        xg = x_projection(patches, wx, b)              # (T*BHW, 4*hid) f32
        xg = xg.reshape(T, BHW, 4 * hid).transpose(0, 2, 1)   # (T, 4*hid, BHW)
        if L != BHW:
            xg = jnp.pad(xg, ((0, 0), (0, 0), (0, L - BHW)))

        last_only = (li == n_layers - 1)
        out = convlstm_layer(xg, whT, masks, shifts, T=T, hid=hid, L=L,
                             last_only=last_only)
        if not last_only:
            # (T, hid, L) bf16 -> (T, B, H, W, hid) for the next layer's im2col
            seq = (out[:, :, :BHW].reshape(T, hid, B, H, W)
                   .transpose(0, 2, 3, 4, 1))

    # Last layer, last timestep hidden state in PyTorch (C,H,W)-flatten order:
    # the transposed layout already has channel-major / spatial-minor ordering.
    h_last = out[:, :BHW]                              # (hid, B*H*W) bf16
    feat = (h_last.reshape(hid, B, H * W).transpose(1, 0, 2)
            .reshape(B, hid * H * W))

    weights = [wl.astype(jnp.bfloat16) for (wl, _) in params["linears"]]
    biases = [bl for (_, bl) in params["linears"]]
    return mlp_head(feat, weights, biases)


if __name__ == "__main__":
    # Small, shape-consistent config.
    B, T = 2, 4
    input_dim, hidden_dim, num_layers = 3, 8, 2
    kernel_size = 3
    H = W = 8
    linear_dim = [64, 32]
    output_dim = 4

    key = jax.random.PRNGKey(0)
    pkey, xkey = jax.random.split(key)
    params = init_params(pkey, kernel_size, input_dim, hidden_dim, num_layers,
                         linear_dim, H, W, output_dim)
    x = jax.random.normal(xkey, (B, T, input_dim, H, W), jnp.float32)

    fwd = jax.jit(predic_model_forward)
    out = fwd(params, x)
    jax.block_until_ready(out)
    assert out.shape == (B, output_dim)
    assert bool(jnp.all(jnp.isfinite(out)))
    print("KERNEL_OK")
</pallas_src>

<mosaic_0001>
module attributes {stable_mosaic.version = 11 : i64} {
  func.func @_xproj_kernel(%arg0: i32, %arg1: memref<256x27xbf16, #tpu.memory_space<vmem>>, %arg2: memref<27x32xbf16, #tpu.memory_space<vmem>>, %arg3: memref<1x32xf32, #tpu.memory_space<vmem>>, %arg4: memref<256x32xf32, #tpu.memory_space<vmem>>) attributes {dimension_semantics = [#tpu.dimension_semantics<parallel>], iteration_bounds = array<i64: 2>, scalar_prefetch = 0 : i64, scratch_operands = 0 : i64, tpu.core_type = #tpu.core_type<tc>, window_params = [{transform_indices = @transform_0, window_bounds = array<i64: 256, 27>}, {pipeline_mode = #tpu.pipeline_mode<synchronous>, transform_indices = @transform_1, window_bounds = array<i64: 27, 32>}, {pipeline_mode = #tpu.pipeline_mode<synchronous>, transform_indices = @transform_2, window_bounds = array<i64: 1, 32>}, {transform_indices = @transform_3, window_bounds = array<i64: 256, 32>}]} {
    %c0 = arith.constant 0 : index
    %c0_0 = arith.constant 0 : index
    %0 = vector.load %arg1[%c0, %c0_0] : memref<256x27xbf16, #tpu.memory_space<vmem>>, vector<256x27xbf16>
    %c0_1 = arith.constant 0 : index
    %c0_2 = arith.constant 0 : index
    %1 = vector.load %arg2[%c0_1, %c0_2] : memref<27x32xbf16, #tpu.memory_space<vmem>>, vector<27x32xbf16>
    %cst = arith.constant dense<0.000000e+00> : vector<256x32xf32>
    %2 = tpu.matmul %0, %1, %cst {dimension_numbers = #tpu.dot_dimension_numbers<[1], [0], [0], [1], [0, 0, 1, 1], [], []>} : vector<256x27xbf16>, vector<27x32xbf16>, vector<256x32xf32> -> vector<256x32xf32>
    %c0_3 = arith.constant 0 : index
    %c0_4 = arith.constant 0 : index
    %3 = vector.load %arg3[%c0_3, %c0_4] : memref<1x32xf32, #tpu.memory_space<vmem>>, vector<1x32xf32>
    %4 = vector.broadcast %3 : vector<1x32xf32> to vector<256x32xf32>
    %5 = arith.addf %2, %4 : vector<256x32xf32>
    %c0_5 = arith.constant 0 : index
    %c0_6 = arith.constant 0 : index
    %6 = vector.load %arg4[%c0_5, %c0_6] : memref<256x32xf32, #tpu.memory_space<vmem>>, vector<256x32xf32>
    tpu.vector_store %arg4[%c0_5, %c0_6], %5 {strides = array<i32>} : memref<256x32xf32, #tpu.memory_space<vmem>>, vector<256x32xf32>,
    return
  }
  func.func @transform_0(%arg0: i32) -> (i32, i32) {
    %c0_i32 = arith.constant 0 : i32
    %c0_i32_0 = arith.constant 0 : i32
    return %arg0, %c0_i32 : i32, i32
  }
  func.func @transform_1(%arg0: i32) -> (i32, i32) {
    %c0_i32 = arith.constant 0 : i32
    %c0_i32_0 = arith.constant 0 : i32
    %c0_i32_1 = arith.constant 0 : i32
    return %c0_i32, %c0_i32_0 : i32, i32
  }
  func.func @transform_2(%arg0: i32) -> (i32, i32) {
    %c0_i32 = arith.constant 0 : i32
    %c0_i32_0 = arith.constant 0 : i32
    %c0_i32_1 = arith.constant 0 : i32
    return %c0_i32, %c0_i32_0 : i32, i32
  }
  func.func @transform_3(%arg0: i32) -> (i32, i32) {
    %c0_i32 = arith.constant 0 : i32
    %c0_i32_0 = arith.constant 0 : i32
    return %arg0, %c0_i32 : i32, i32
  }
}

module attributes {stable_mosaic.version = 11 : i64} {
  func.func @_convlstm_layer_kernel(%arg0: i32, %arg1: memref<1x32x128xf32, #tpu.memory_space<vmem>>, %arg2: memref<32x72xbf16, #tpu.memory_space<vmem>>, %arg3: memref<9x128xf32, #tpu.memory_space<vmem>>, %arg4: memref<1x8x128xbf16, #tpu.memory_space<vmem>>, %arg5: memref<8x128xf32, #tpu.memory_space<vmem>>, %arg6: memref<8x128xf32, #tpu.memory_space<vmem>>) attributes {dimension_semantics = [#tpu.dimension_semantics<arbitrary>], iteration_bounds = array<i64: 4>, scalar_prefetch = 0 : i64, scratch_operands = 2 : i64, tpu.core_type = #tpu.core_type<tc>, window_params = [{transform_indices = @transform_0, window_bounds = array<i64: 1, 32, 128>}, {pipeline_mode = #tpu.pipeline_mode<synchronous>, transform_indices = @transform_1, window_bounds = array<i64: 32, 72>}, {pipeline_mode = #tpu.pipeline_mode<synchronous>, transform_indices = @transform_2, window_bounds = array<i64: 9, 128>}, {transform_indices = @transform_3, window_bounds = array<i64: 1, 8, 128>}]} {
    %c0_i32 = arith.constant 0 : i32
    %0 = arith.cmpi eq, %arg0, %c0_i32 : i32
    %1 = arith.extui %0 : i1 to i32
    %c0_i32_0 = arith.constant 0 : i32
    %2 = arith.cmpi ne, %1, %c0_i32_0 : i32
    scf.if %2 {
      %cst_21 = arith.constant 0.000000e+00 : f32
      %79 = vector.broadcast %cst_21 : f32 to vector<8x128xf32>
      %c0_22 = arith.constant 0 : index
      %c0_23 = arith.constant 0 : index
      %80 = vector.load %arg5[%c0_22, %c0_23] : memref<8x128xf32, #tpu.memory_space<vmem>>, vector<8x128xf32>
      tpu.vector_store %arg5[%c0_22, %c0_23], %79 {strides = array<i32>} : memref<8x128xf32, #tpu.memory_space<vmem>>, vector<8x128xf32>,
      %cst_24 = arith.constant 0.000000e+00 : f32
      %81 = vector.broadcast %cst_24 : f32 to vector<8x128xf32>
      %c0_25 = arith.constant 0 : index
      %c0_26 = arith.constant 0 : index
      %82 = vector.load %arg6[%c0_25, %c0_26] : memref<8x128xf32, #tpu.memory_space<vmem>>, vector<8x128xf32>
      tpu.vector_store %arg6[%c0_25, %c0_26], %81 {strides = array<i32>} : memref<8x128xf32, #tpu.memory_space<vmem>>, vector<8x128xf32>,
    } else {
    }
    %c0 = arith.constant 0 : index
    %c0_1 = arith.constant 0 : index
    %3 = vector.load %arg5[%c0, %c0_1] : memref<8x128xf32, #tpu.memory_space<vmem>>, vector<8x128xf32>
    %c0_2 = arith.constant 0 : index
    %c0_3 = arith.constant 0 : index
    %4 = vector.load %arg3[%c0_2, %c0_3] : memref<9x128xf32, #tpu.memory_space<vmem>>, vector<9x128xf32>
    %c9_i32 = arith.constant 9 : i32
    %5 = tpu.dynamic_rotate %3 by %c9_i32 dim 1 : vector<8x128xf32>, i32 -> vector<8x128xf32>
    %6 = vector.extract_strided_slice %4 {offsets = [0, 0], sizes = [1, 128], strides = [1, 1]} : vector<9x128xf32> to vector<1x128xf32>
    %7 = vector.broadcast %6 : vector<1x128xf32> to vector<8x128xf32>
    %8 = arith.mulf %7, %5 : vector<8x128xf32>
    %c8_i32 = arith.constant 8 : i32
    %9 = tpu.dynamic_rotate %3 by %c8_i32 dim 1 : vector<8x128xf32>, i32 -> vector<8x128xf32>
    %10 = vector.extract_strided_slice %4 {offsets = [1, 0], sizes = [1, 128], strides = [1, 1]} : vector<9x128xf32> to vector<1x128xf32>
    %11 = vector.broadcast %10 : vector<1x128xf32> to vector<8x128xf32>
    %12 = arith.mulf %11, %9 : vector<8x128xf32>
    %c7_i32 = arith.constant 7 : i32
    %13 = tpu.dynamic_rotate %3 by %c7_i32 dim 1 : vector<8x128xf32>, i32 -> vector<8x128xf32>
    %14 = vector.extract_strided_slice %4 {offsets = [2, 0], sizes = [1, 128], strides = [1, 1]} : vector<9x128xf32> to vector<1x128xf32>
    %15 = vector.broadcast %14 : vector<1x128xf32> to vector<8x128xf32>
    %16 = arith.mulf %15, %13 : vector<8x128xf32>
    %c1_i32 = arith.constant 1 : i32
    %17 = tpu.dynamic_rotate %3 by %c1_i32 dim 1 : vector<8x128xf32>, i32 -> vector<8x128xf32>
    %18 = vector.extract_strided_slice %4 {offsets = [3, 0], sizes = [1, 128], strides = [1, 1]} : vector<9x128xf32> to vector<1x128xf32>
    %19 = vector.broadcast %18 : vector<1x128xf32> to vector<8x128xf32>
    %20 = arith.mulf %19, %17 : vector<8x128xf32>
    %21 = vector.extract_strided_slice %4 {offsets = [4, 0], sizes = [1, 128], strides = [1, 1]} : vector<9x128xf32> to vector<1x128xf32>
    %22 = vector.broadcast %21 : vector<1x128xf32> to vector<8x128xf32>
    %23 = arith.mulf %22, %3 : vector<8x128xf32>
    %c127_i32 = arith.constant 127 : i32
    %24 = tpu.dynamic_rotate %3 by %c127_i32 dim 1 : vector<8x128xf32>, i32 -> vector<8x128xf32>
    %25 = vector.extract_strided_slice %4 {offsets = [5, 0], sizes = [1, 128], strides = [1, 1]} : vector<9x128xf32> to vector<1x128xf32>
    %26 = vector.broadcast %25 : vector<1x128xf32> to vector<8x128xf32>
    %27 = arith.mulf %26, %24 : vector<8x128xf32>
    %c121_i32 = arith.constant 121 : i32
    %28 = tpu.dynamic_rotate %3 by %c121_i32 dim 1 : vector<8x128xf32>, i32 -> vector<8x128xf32>
    %29 = vector.extract_strided_slice %4 {offsets = [6, 0], sizes = [1, 128], strides = [1, 1]} : vector<9x128xf32> to vector<1x128xf32>
    %30 = vector.broadcast %29 : vector<1x128xf32> to vector<8x128xf32>
    %31 = arith.mulf %30, %28 : vector<8x128xf32>
    %c120_i32 = arith.constant 120 : i32
    %32 = tpu.dynamic_rotate %3 by %c120_i32 dim 1 : vector<8x128xf32>, i32 -> vector<8x128xf32>
    %33 = vector.extract_strided_slice %4 {offsets = [7, 0], sizes = [1, 128], strides = [1, 1]} : vector<9x128xf32> to vector<1x128xf32>
    %34 = vector.broadcast %33 : vector<1x128xf32> to vector<8x128xf32>
    %35 = arith.mulf %34, %32 : vector<8x128xf32>
    %c119_i32 = arith.constant 119 : i32
    %36 = tpu.dynamic_rotate %3 by %c119_i32 dim 1 : vector<8x128xf32>, i32 -> vector<8x128xf32>
    %37 = vector.extract_strided_slice %4 {offsets = [8, 0], sizes = [1, 128], strides = [1, 1]} : vector<9x128xf32> to vector<1x128xf32>
    %38 = vector.broadcast %37 : vector<1x128xf32> to vector<8x128xf32>
    %39 = arith.mulf %38, %36 : vector<8x128xf32>
    %40 = tpu.concatenate %8, %12, %16, %20, %23, %27, %31, %35, %39 in 0 : vector<8x128xf32>, vector<8x128xf32>, vector<8x128xf32>, vector<8x128xf32>, vector<8x128xf32>, vector<8x128xf32>, vector<8x128xf32>, vector<8x128xf32>, vector<8x128xf32> -> vector<72x128xf32>
    %41 = arith.truncf %40 : vector<72x128xf32> to vector<72x128xbf16>
    %c0_4 = arith.constant 0 : index
    %c0_5 = arith.constant 0 : index
    %c0_6 = arith.constant 0 : index
    %42 = vector.load %arg1[%c0_4, %c0_5, %c0_6] : memref<1x32x128xf32, #tpu.memory_space<vmem>>, vector<1x32x128xf32>
    %43 = vector.shape_cast %42 : vector<1x32x128xf32> to vector<32x128xf32>
    %c0_7 = arith.constant 0 : index
    %c0_8 = arith.constant 0 : index
    %44 = vector.load %arg2[%c0_7, %c0_8] : memref<32x72xbf16, #tpu.memory_space<vmem>>, vector<32x72xbf16>
    %cst = arith.constant dense<0.000000e+00> : vector<32x128xf32>
    %45 = tpu.matmul %44, %41, %cst {dimension_numbers = #tpu.dot_dimension_numbers<[1], [0], [0], [1], [0, 0, 1, 1], [], []>} : vector<32x72xbf16>, vector<72x128xbf16>, vector<32x128xf32> -> vector<32x128xf32>
    %46 = arith.addf %43, %45 : vector<32x128xf32>
    %47 = vector.extract_strided_slice %46 {offsets = [0, 0], sizes = [8, 128], strides = [1, 1]} : vector<32x128xf32> to vector<8x128xf32>
    %48 = arith.negf %47 : vector<8x128xf32>
    %49 = math.exp %48 : vector<8x128xf32>
    %cst_9 = arith.constant 1.000000e+00 : f32
    %50 = vector.broadcast %cst_9 : f32 to vector<8x128xf32>
    %51 = arith.addf %50, %49 : vector<8x128xf32>
    %52 = arith.divf %50, %51 : vector<8x128xf32>
    %53 = vector.extract_strided_slice %46 {offsets = [8, 0], sizes = [8, 128], strides = [1, 1]} : vector<32x128xf32> to vector<8x128xf32>
    %54 = arith.negf %53 : vector<8x128xf32>
    %55 = math.exp %54 : vector<8x128xf32>
    %cst_10 = arith.constant 1.000000e+00 : f32
    %56 = vector.broadcast %cst_10 : f32 to vector<8x128xf32>
    %57 = arith.addf %56, %55 : vector<8x128xf32>
    %58 = arith.divf %56, %57 : vector<8x128xf32>
    %59 = vector.extract_strided_slice %46 {offsets = [16, 0], sizes = [8, 128], strides = [1, 1]} : vector<32x128xf32> to vector<8x128xf32>
    %60 = arith.negf %59 : vector<8x128xf32>
    %61 = math.exp %60 : vector<8x128xf32>
    %cst_11 = arith.constant 1.000000e+00 : f32
    %62 = vector.broadcast %cst_11 : f32 to vector<8x128xf32>
    %63 = arith.addf %62, %61 : vector<8x128xf32>
    %64 = arith.divf %62, %63 : vector<8x128xf32>
    %65 = vector.extract_strided_slice %46 {offsets = [24, 0], sizes = [8, 128], strides = [1, 1]} : vector<32x128xf32> to vector<8x128xf32>
    %66 = math.tanh %65 : vector<8x128xf32>
    %c0_12 = arith.constant 0 : index
    %c0_13 = arith.constant 0 : index
    %67 = vector.load %arg6[%c0_12, %c0_13] : memref<8x128xf32, #tpu.memory_space<vmem>>, vector<8x128xf32>
    %68 = arith.mulf %58, %67 : vector<8x128xf32>
    %69 = arith.mulf %52, %66 : vector<8x128xf32>
    %70 = arith.addf %68, %69 : vector<8x128xf32>
    %71 = math.tanh %70 : vector<8x128xf32>
    %72 = arith.mulf %64, %71 : vector<8x128xf32>
    %c0_14 = arith.constant 0 : index
    %c0_15 = arith.constant 0 : index
    %73 = vector.load %arg6[%c0_14, %c0_15] : memref<8x128xf32, #tpu.memory_space<vmem>>, vector<8x128xf32>
    tpu.vector_store %arg6[%c0_14, %c0_15], %70 {strides = array<i32>} : memref<8x128xf32, #tpu.memory_space<vmem>>, vector<8x128xf32>,
    %c0_16 = arith.constant 0 : index
    %c0_17 = arith.constant 0 : index
    %74 = vector.load %arg5[%c0_16, %c0_17] : memref<8x128xf32, #tpu.memory_space<vmem>>, vector<8x128xf32>
    tpu.vector_store %arg5[%c0_16, %c0_17], %72 {strides = array<i32>} : memref<8x128xf32, #tpu.memory_space<vmem>>, vector<8x128xf32>,
    %75 = arith.truncf %72 : vector<8x128xf32> to vector<8x128xbf16>
    %c0_18 = arith.constant 0 : index
    %c0_19 = arith.constant 0 : index
    %c0_20 = arith.constant 0 : index
    %76 = vector.load %arg4[%c0_18, %c0_19, %c0_20] : memref<1x8x128xbf16, #tpu.memory_space<vmem>>, vector<1x8x128xbf16>
    %77 = vector.shape_cast %76 : vector<1x8x128xbf16> to vector<8x128xbf16>
    %78 = vector.shape_cast %75 : vector<8x128xbf16> to vector<1x8x128xbf16>
    tpu.vector_store %arg4[%c0_18, %c0_19, %c0_20], %78 {strides = array<i32>} : memref<1x8x128xbf16, #tpu.memory_space<vmem>>, vector<1x8x128xbf16>,
    return
  }
  func.func @transform_0(%arg0: i32) -> (i32, i32, i32) {
    %c0_i32 = arith.constant 0 : i32
    %c0_i32_0 = arith.constant 0 : i32
    %c0_i32_1 = arith.constant 0 : i32
    return %arg0, %c0_i32, %c0_i32_0 : i32, i32, i32
  }
  func.func @transform_1(%arg0: i32) -> (i32, i32) {
    %c0_i32 = arith.constant 0 : i32
    %c0_i32_0 = arith.constant 0 : i32
    %c0_i32_1 = arith.constant 0 : i32
    return %c0_i32, %c0_i32_0 : i32, i32
  }
  func.func @transform_2(%arg0: i32) -> (i32, i32) {
    %c0_i32 = arith.constant 0 : i32
    %c0_i32_0 = arith.constant 0 : i32
    %c0_i32_1 = arith.constant 0 : i32
    return %c0_i32, %c0_i32_0 : i32, i32
  }
  func.func @transform_3(%arg0: i32) -> (i32, i32, i32) {
    %c0_i32 = arith.constant 0 : i32
    %c0_i32_0 = arith.constant 0 : i32
    %c0_i32_1 = arith.constant 0 : i32
    return %arg0, %c0_i32, %c0_i32_0 : i32, i32, i32
  }
}

module attributes {stable_mosaic.version = 11 : i64} {
  func.func @_xproj_kernel(%arg0: i32, %arg1: memref<256x72xbf16, #tpu.memory_space<vmem>>, %arg2: memref<72x32xbf16, #tpu.memory_space<vmem>>, %arg3: memref<1x32xf32, #tpu.memory_space<vmem>>, %arg4: memref<256x32xf32, #tpu.memory_space<vmem>>) attributes {dimension_semantics = [#tpu.dimension_semantics<parallel>], iteration_bounds = array<i64: 2>, scalar_prefetch = 0 : i64, scratch_operands = 0 : i64, tpu.core_type = #tpu.core_type<tc>, window_params = [{transform_indices = @transform_0, window_bounds = array<i64: 256, 72>}, {pipeline_mode = #tpu.pipeline_mode<synchronous>, transform_indices = @transform_1, window_bounds = array<i64: 72, 32>}, {pipeline_mode = #tpu.pipeline_mode<synchronous>, transform_indices = @transform_2, window_bounds = array<i64: 1, 32>}, {transform_indices = @transform_3, window_bounds = array<i64: 256, 32>}]} {
    %c0 = arith.constant 0 : index
    %c0_0 = arith.constant 0 : index
    %0 = vector.load %arg1[%c0, %c0_0] : memref<256x72xbf16, #tpu.memory_space<vmem>>, vector<256x72xbf16>
    %c0_1 = arith.constant 0 : index
    %c0_2 = arith.constant 0 : index
    %1 = vector.load %arg2[%c0_1, %c0_2] : memref<72x32xbf16, #tpu.memory_space<vmem>>, vector<72x32xbf16>
    %cst = arith.constant dense<0.000000e+00> : vector<256x32xf32>
    %2 = tpu.matmul %0, %1, %cst {dimension_numbers = #tpu.dot_dimension_numbers<[1], [0], [0], [1], [0, 0, 1, 1], [], []>} : vector<256x72xbf16>, vector<72x32xbf16>, vector<256x32xf32> -> vector<256x32xf32>
    %c0_3 = arith.constant 0 : index
    %c0_4 = arith.constant 0 : index
    %3 = vector.load %arg3[%c0_3, %c0_4] : memref<1x32xf32, #tpu.memory_space<vmem>>, vector<1x32xf32>
    %4 = vector.broadcast %3 : vector<1x32xf32> to vector<256x32xf32>
    %5 = arith.addf %2, %4 : vector<256x32xf32>
    %c0_5 = arith.constant 0 : index
    %c0_6 = arith.constant 0 : index
    %6 = vector.load %arg4[%c0_5, %c0_6] : memref<256x32xf32, #tpu.memory_space<vmem>>, vector<256x32xf32>
    tpu.vector_store %arg4[%c0_5, %c0_6], %5 {strides = array<i32>} : memref<256x32xf32, #tpu.memory_space<vmem>>, vector<256x32xf32>,
    return
  }
  func.func @transform_0(%arg0: i32) -> (i32, i32) {
    %c0_i32 = arith.constant 0 : i32
    %c0_i32_0 = arith.constant 0 : i32
    return %arg0, %c0_i32 : i32, i32
  }
  func.func @transform_1(%arg0: i32) -> (i32, i32) {
    %c0_i32 = arith.constant 0 : i32
    %c0_i32_0 = arith.constant 0 : i32
    %c0_i32_1 = arith.constant 0 : i32
    return %c0_i32, %c0_i32_0 : i32, i32
  }
  func.func @transform_2(%arg0: i32) -> (i32, i32) {
    %c0_i32 = arith.constant 0 : i32
    %c0_i32_0 = arith.constant 0 : i32
    %c0_i32_1 = arith.constant 0 : i32
    return %c0_i32, %c0_i32_0 : i32, i32
  }
  func.func @transform_3(%arg0: i32) -> (i32, i32) {
    %c0_i32 = arith.constant 0 : i32
    %c0_i32_0 = arith.constant 0 : i32
    return %arg0, %c0_i32 : i32, i32
  }
}

module attributes {stable_mosaic.version = 11 : i64} {
  func.func @_convlstm_layer_kernel(%arg0: i32, %arg1: memref<1x32x128xf32, #tpu.memory_space<vmem>>, %arg2: memref<32x72xbf16, #tpu.memory_space<vmem>>, %arg3: memref<9x128xf32, #tpu.memory_space<vmem>>, %arg4: memref<8x128xbf16, #tpu.memory_space<vmem>>, %arg5: memref<8x128xf32, #tpu.memory_space<vmem>>, %arg6: memref<8x128xf32, #tpu.memory_space<vmem>>) attributes {dimension_semantics = [#tpu.dimension_semantics<arbitrary>], iteration_bounds = array<i64: 4>, scalar_prefetch = 0 : i64, scratch_operands = 2 : i64, tpu.core_type = #tpu.core_type<tc>, window_params = [{transform_indices = @transform_0, window_bounds = array<i64: 1, 32, 128>}, {pipeline_mode = #tpu.pipeline_mode<synchronous>, transform_indices = @transform_1, window_bounds = array<i64: 32, 72>}, {pipeline_mode = #tpu.pipeline_mode<synchronous>, transform_indices = @transform_2, window_bounds = array<i64: 9, 128>}, {pipeline_mode = #tpu.pipeline_mode<synchronous>, transform_indices = @transform_3, window_bounds = array<i64: 8, 128>}]} {
    %c0_i32 = arith.constant 0 : i32
    %0 = arith.cmpi eq, %arg0, %c0_i32 : i32
    %1 = arith.extui %0 : i1 to i32
    %c0_i32_0 = arith.constant 0 : i32
    %2 = arith.cmpi ne, %1, %c0_i32_0 : i32
    scf.if %2 {
      %cst_19 = arith.constant 0.000000e+00 : f32
      %78 = vector.broadcast %cst_19 : f32 to vector<8x128xf32>
      %c0_20 = arith.constant 0 : index
      %c0_21 = arith.constant 0 : index
      %79 = vector.load %arg5[%c0_20, %c0_21] : memref<8x128xf32, #tpu.memory_space<vmem>>, vector<8x128xf32>
      tpu.vector_store %arg5[%c0_20, %c0_21], %78 {strides = array<i32>} : memref<8x128xf32, #tpu.memory_space<vmem>>, vector<8x128xf32>,
      %cst_22 = arith.constant 0.000000e+00 : f32
      %80 = vector.broadcast %cst_22 : f32 to vector<8x128xf32>
      %c0_23 = arith.constant 0 : index
      %c0_24 = arith.constant 0 : index
      %81 = vector.load %arg6[%c0_23, %c0_24] : memref<8x128xf32, #tpu.memory_space<vmem>>, vector<8x128xf32>
      tpu.vector_store %arg6[%c0_23, %c0_24], %80 {strides = array<i32>} : memref<8x128xf32, #tpu.memory_space<vmem>>, vector<8x128xf32>,
    } else {
    }
    %c0 = arith.constant 0 : index
    %c0_1 = arith.constant 0 : index
    %3 = vector.load %arg5[%c0, %c0_1] : memref<8x128xf32, #tpu.memory_space<vmem>>, vector<8x128xf32>
    %c0_2 = arith.constant 0 : index
    %c0_3 = arith.constant 0 : index
    %4 = vector.load %arg3[%c0_2, %c0_3] : memref<9x128xf32, #tpu.memory_space<vmem>>, vector<9x128xf32>
    %c9_i32 = arith.constant 9 : i32
    %5 = tpu.dynamic_rotate %3 by %c9_i32 dim 1 : vector<8x128xf32>, i32 -> vector<8x128xf32>
    %6 = vector.extract_strided_slice %4 {offsets = [0, 0], sizes = [1, 128], strides = [1, 1]} : vector<9x128xf32> to vector<1x128xf32>
    %7 = vector.broadcast %6 : vector<1x128xf32> to vector<8x128xf32>
    %8 = arith.mulf %7, %5 : vector<8x128xf32>
    %c8_i32 = arith.constant 8 : i32
    %9 = tpu.dynamic_rotate %3 by %c8_i32 dim 1 : vector<8x128xf32>, i32 -> vector<8x128xf32>
    %10 = vector.extract_strided_slice %4 {offsets = [1, 0], sizes = [1, 128], strides = [1, 1]} : vector<9x128xf32> to vector<1x128xf32>
    %11 = vector.broadcast %10 : vector<1x128xf32> to vector<8x128xf32>
    %12 = arith.mulf %11, %9 : vector<8x128xf32>
    %c7_i32 = arith.constant 7 : i32
    %13 = tpu.dynamic_rotate %3 by %c7_i32 dim 1 : vector<8x128xf32>, i32 -> vector<8x128xf32>
    %14 = vector.extract_strided_slice %4 {offsets = [2, 0], sizes = [1, 128], strides = [1, 1]} : vector<9x128xf32> to vector<1x128xf32>
    %15 = vector.broadcast %14 : vector<1x128xf32> to vector<8x128xf32>
    %16 = arith.mulf %15, %13 : vector<8x128xf32>
    %c1_i32 = arith.constant 1 : i32
    %17 = tpu.dynamic_rotate %3 by %c1_i32 dim 1 : vector<8x128xf32>, i32 -> vector<8x128xf32>
    %18 = vector.extract_strided_slice %4 {offsets = [3, 0], sizes = [1, 128], strides = [1, 1]} : vector<9x128xf32> to vector<1x128xf32>
    %19 = vector.broadcast %18 : vector<1x128xf32> to vector<8x128xf32>
    %20 = arith.mulf %19, %17 : vector<8x128xf32>
    %21 = vector.extract_strided_slice %4 {offsets = [4, 0], sizes = [1, 128], strides = [1, 1]} : vector<9x128xf32> to vector<1x128xf32>
    %22 = vector.broadcast %21 : vector<1x128xf32> to vector<8x128xf32>
    %23 = arith.mulf %22, %3 : vector<8x128xf32>
    %c127_i32 = arith.constant 127 : i32
    %24 = tpu.dynamic_rotate %3 by %c127_i32 dim 1 : vector<8x128xf32>, i32 -> vector<8x128xf32>
    %25 = vector.extract_strided_slice %4 {offsets = [5, 0], sizes = [1, 128], strides = [1, 1]} : vector<9x128xf32> to vector<1x128xf32>
    %26 = vector.broadcast %25 : vector<1x128xf32> to vector<8x128xf32>
    %27 = arith.mulf %26, %24 : vector<8x128xf32>
    %c121_i32 = arith.constant 121 : i32
    %28 = tpu.dynamic_rotate %3 by %c121_i32 dim 1 : vector<8x128xf32>, i32 -> vector<8x128xf32>
    %29 = vector.extract_strided_slice %4 {offsets = [6, 0], sizes = [1, 128], strides = [1, 1]} : vector<9x128xf32> to vector<1x128xf32>
    %30 = vector.broadcast %29 : vector<1x128xf32> to vector<8x128xf32>
    %31 = arith.mulf %30, %28 : vector<8x128xf32>
    %c120_i32 = arith.constant 120 : i32
    %32 = tpu.dynamic_rotate %3 by %c120_i32 dim 1 : vector<8x128xf32>, i32 -> vector<8x128xf32>
    %33 = vector.extract_strided_slice %4 {offsets = [7, 0], sizes = [1, 128], strides = [1, 1]} : vector<9x128xf32> to vector<1x128xf32>
    %34 = vector.broadcast %33 : vector<1x128xf32> to vector<8x128xf32>
    %35 = arith.mulf %34, %32 : vector<8x128xf32>
    %c119_i32 = arith.constant 119 : i32
    %36 = tpu.dynamic_rotate %3 by %c119_i32 dim 1 : vector<8x128xf32>, i32 -> vector<8x128xf32>
    %37 = vector.extract_strided_slice %4 {offsets = [8, 0], sizes = [1, 128], strides = [1, 1]} : vector<9x128xf32> to vector<1x128xf32>
    %38 = vector.broadcast %37 : vector<1x128xf32> to vector<8x128xf32>
    %39 = arith.mulf %38, %36 : vector<8x128xf32>
    %40 = tpu.concatenate %8, %12, %16, %20, %23, %27, %31, %35, %39 in 0 : vector<8x128xf32>, vector<8x128xf32>, vector<8x128xf32>, vector<8x128xf32>, vector<8x128xf32>, vector<8x128xf32>, vector<8x128xf32>, vector<8x128xf32>, vector<8x128xf32> -> vector<72x128xf32>
    %41 = arith.truncf %40 : vector<72x128xf32> to vector<72x128xbf16>
    %c0_4 = arith.constant 0 : index
    %c0_5 = arith.constant 0 : index
    %c0_6 = arith.constant 0 : index
    %42 = vector.load %arg1[%c0_4, %c0_5, %c0_6] : memref<1x32x128xf32, #tpu.memory_space<vmem>>, vector<1x32x128xf32>
    %43 = vector.shape_cast %42 : vector<1x32x128xf32> to vector<32x128xf32>
    %c0_7 = arith.constant 0 : index
    %c0_8 = arith.constant 0 : index
    %44 = vector.load %arg2[%c0_7, %c0_8] : memref<32x72xbf16, #tpu.memory_space<vmem>>, vector<32x72xbf16>
    %cst = arith.constant dense<0.000000e+00> : vector<32x128xf32>
    %45 = tpu.matmul %44, %41, %cst {dimension_numbers = #tpu.dot_dimension_numbers<[1], [0], [0], [1], [0, 0, 1, 1], [], []>} : vector<32x72xbf16>, vector<72x128xbf16>, vector<32x128xf32> -> vector<32x128xf32>
    %46 = arith.addf %43, %45 : vector<32x128xf32>
    %47 = vector.extract_strided_slice %46 {offsets = [0, 0], sizes = [8, 128], strides = [1, 1]} : vector<32x128xf32> to vector<8x128xf32>
    %48 = arith.negf %47 : vector<8x128xf32>
    %49 = math.exp %48 : vector<8x128xf32>
    %cst_9 = arith.constant 1.000000e+00 : f32
    %50 = vector.broadcast %cst_9 : f32 to vector<8x128xf32>
    %51 = arith.addf %50, %49 : vector<8x128xf32>
    %52 = arith.divf %50, %51 : vector<8x128xf32>
    %53 = vector.extract_strided_slice %46 {offsets = [8, 0], sizes = [8, 128], strides = [1, 1]} : vector<32x128xf32> to vector<8x128xf32>
    %54 = arith.negf %53 : vector<8x128xf32>
    %55 = math.exp %54 : vector<8x128xf32>
    %cst_10 = arith.constant 1.000000e+00 : f32
    %56 = vector.broadcast %cst_10 : f32 to vector<8x128xf32>
    %57 = arith.addf %56, %55 : vector<8x128xf32>
    %58 = arith.divf %56, %57 : vector<8x128xf32>
    %59 = vector.extract_strided_slice %46 {offsets = [16, 0], sizes = [8, 128], strides = [1, 1]} : vector<32x128xf32> to vector<8x128xf32>
    %60 = arith.negf %59 : vector<8x128xf32>
    %61 = math.exp %60 : vector<8x128xf32>
    %cst_11 = arith.constant 1.000000e+00 : f32
    %62 = vector.broadcast %cst_11 : f32 to vector<8x128xf32>
    %63 = arith.addf %62, %61 : vector<8x128xf32>
    %64 = arith.divf %62, %63 : vector<8x128xf32>
    %65 = vector.extract_strided_slice %46 {offsets = [24, 0], sizes = [8, 128], strides = [1, 1]} : vector<32x128xf32> to vector<8x128xf32>
    %66 = math.tanh %65 : vector<8x128xf32>
    %c0_12 = arith.constant 0 : index
    %c0_13 = arith.constant 0 : index
    %67 = vector.load %arg6[%c0_12, %c0_13] : memref<8x128xf32, #tpu.memory_space<vmem>>, vector<8x128xf32>
    %68 = arith.mulf %58, %67 : vector<8x128xf32>
    %69 = arith.mulf %52, %66 : vector<8x128xf32>
    %70 = arith.addf %68, %69 : vector<8x128xf32>
    %71 = math.tanh %70 : vector<8x128xf32>
    %72 = arith.mulf %64, %71 : vector<8x128xf32>
    %c0_14 = arith.constant 0 : index
    %c0_15 = arith.constant 0 : index
    %73 = vector.load %arg6[%c0_14, %c0_15] : memref<8x128xf32, #tpu.memory_space<vmem>>, vector<8x128xf32>
    tpu.vector_store %arg6[%c0_14, %c0_15], %70 {strides = array<i32>} : memref<8x128xf32, #tpu.memory_space<vmem>>, vector<8x128xf32>,
    %c0_16 = arith.constant 0 : index
    %c0_17 = arith.constant 0 : index
    %74 = vector.load %arg5[%c0_16, %c0_17] : memref<8x128xf32, #tpu.memory_space<vmem>>, vector<8x128xf32>
    tpu.vector_store %arg5[%c0_16, %c0_17], %72 {strides = array<i32>} : memref<8x128xf32, #tpu.memory_space<vmem>>, vector<8x128xf32>,
    %c3_i32 = arith.constant 3 : i32
    %75 = arith.cmpi eq, %arg0, %c3_i32 : i32
    %76 = arith.extui %75 : i1 to i32
    %c0_i32_18 = arith.constant 0 : i32
    %77 = arith.cmpi ne, %76, %c0_i32_18 : i32
    scf.if %77 {
      %78 = arith.truncf %72 : vector<8x128xf32> to vector<8x128xbf16>
      %c0_19 = arith.constant 0 : index
      %c0_20 = arith.constant 0 : index
      %79 = vector.load %arg4[%c0_19, %c0_20] : memref<8x128xbf16, #tpu.memory_space<vmem>>, vector<8x128xbf16>
      tpu.vector_store %arg4[%c0_19, %c0_20], %78 {strides = array<i32>} : memref<8x128xbf16, #tpu.memory_space<vmem>>, vector<8x128xbf16>,
    } else {
    }
    return
  }
  func.func @transform_0(%arg0: i32) -> (i32, i32, i32) {
    %c0_i32 = arith.constant 0 : i32
    %c0_i32_0 = arith.constant 0 : i32
    %c0_i32_1 = arith.constant 0 : i32
    return %arg0, %c0_i32, %c0_i32_0 : i32, i32, i32
  }
  func.func @transform_1(%arg0: i32) -> (i32, i32) {
    %c0_i32 = arith.constant 0 : i32
    %c0_i32_0 = arith.constant 0 : i32
    %c0_i32_1 = arith.constant 0 : i32
    return %c0_i32, %c0_i32_0 : i32, i32
  }
  func.func @transform_2(%arg0: i32) -> (i32, i32) {
    %c0_i32 = arith.constant 0 : i32
    %c0_i32_0 = arith.constant 0 : i32
    %c0_i32_1 = arith.constant 0 : i32
    return %c0_i32, %c0_i32_0 : i32, i32
  }
  func.func @transform_3(%arg0: i32) -> (i32, i32) {
    %c0_i32 = arith.constant 0 : i32
    %c0_i32_0 = arith.constant 0 : i32
    %c0_i32_1 = arith.constant 0 : i32
    return %c0_i32, %c0_i32_0 : i32, i32
  }
}

module attributes {stable_mosaic.version = 11 : i64} {
  func.func @_mlp_head_kernel(%arg0: i32, %arg1: memref<2x256xbf16, #tpu.memory_space<vmem>>, %arg2: memref<256x64xbf16, #tpu.memory_space<vmem>>, %arg3: memref<1x64xf32, #tpu.memory_space<vmem>>, %arg4: memref<64x32xbf16, #tpu.memory_space<vmem>>, %arg5: memref<1x32xf32, #tpu.memory_space<vmem>>, %arg6: memref<32x4xbf16, #tpu.memory_space<vmem>>, %arg7: memref<1x4xf32, #tpu.memory_space<vmem>>, %arg8: memref<2x4xf32, #tpu.memory_space<vmem>>, %arg9: memref<2x64xf32, #tpu.memory_space<vmem>>) attributes {dimension_semantics = [#tpu.dimension_semantics<arbitrary>], iteration_bounds = array<i64: 2>, scalar_prefetch = 0 : i64, scratch_operands = 1 : i64, tpu.core_type = #tpu.core_type<tc>, window_params = [{transform_indices = @transform_0, window_bounds = array<i64: 2, 256>}, {transform_indices = @transform_1, window_bounds = array<i64: 256, 64>}, {pipeline_mode = #tpu.pipeline_mode<synchronous>, transform_indices = @transform_2, window_bounds = array<i64: 1, 64>}, {pipeline_mode = #tpu.pipeline_mode<synchronous>, transform_indices = @transform_3, window_bounds = array<i64: 64, 32>}, {pipeline_mode = #tpu.pipeline_mode<synchronous>, transform_indices = @transform_4, window_bounds = array<i64: 1, 32>}, {pipeline_mode = #tpu.pipeline_mode<synchronous>, transform_indices = @transform_5, window_bounds = array<i64: 32, 4>}, {pipeline_mode = #tpu.pipeline_mode<synchronous>, transform_indices = @transform_6, window_bounds = array<i64: 1, 4>}, {pipeline_mode = #tpu.pipeline_mode<synchronous>, transform_indices = @transform_7, window_bounds = array<i64: 2, 4>}]} {
    %c0_i32 = arith.constant 0 : i32
    %0 = arith.cmpi eq, %arg0, %c0_i32 : i32
    %1 = arith.extui %0 : i1 to i32
    %c0_i32_0 = arith.constant 0 : i32
    %2 = arith.cmpi ne, %1, %c0_i32_0 : i32
    scf.if %2 {
      %cst_9 = arith.constant 0.000000e+00 : f32
      %12 = vector.broadcast %cst_9 : f32 to vector<2x64xf32>
      %c0_10 = arith.constant 0 : index
      %c0_11 = arith.constant 0 : index
      %13 = vector.load %arg9[%c0_10, %c0_11] : memref<2x64xf32, #tpu.memory_space<vmem>>, vector<2x64xf32>
      tpu.vector_store %arg9[%c0_10, %c0_11], %12 {strides = array<i32>} : memref<2x64xf32, #tpu.memory_space<vmem>>, vector<2x64xf32>,
    } else {
    }
    %c0 = arith.constant 0 : index
    %c0_1 = arith.constant 0 : index
    %3 = vector.load %arg9[%c0, %c0_1] : memref<2x64xf32, #tpu.memory_space<vmem>>, vector<2x64xf32>
    %c0_2 = arith.constant 0 : index
    %c0_3 = arith.constant 0 : index
    %4 = vector.load %arg1[%c0_2, %c0_3] : memref<2x256xbf16, #tpu.memory_space<vmem>>, vector<2x256xbf16>
    %c0_4 = arith.constant 0 : index
    %c0_5 = arith.constant 0 : index
    %5 = vector.load %arg2[%c0_4, %c0_5] : memref<256x64xbf16, #tpu.memory_space<vmem>>, vector<256x64xbf16>
    %cst = arith.constant dense<0.000000e+00> : vector<2x64xf32>
    %6 = tpu.matmul %4, %5, %cst {dimension_numbers = #tpu.dot_dimension_numbers<[1], [0], [0], [1], [0, 0, 1, 1], [], []>} : vector<2x256xbf16>, vector<256x64xbf16>, vector<2x64xf32> -> vector<2x64xf32>
    %7 = arith.addf %3, %6 : vector<2x64xf32>
    %c0_6 = arith.constant 0 : index
    %c0_7 = arith.constant 0 : index
    %8 = vector.load %arg9[%c0_6, %c0_7] : memref<2x64xf32, #tpu.memory_space<vmem>>, vector<2x64xf32>
    tpu.vector_store %arg9[%c0_6, %c0_7], %7 {strides = array<i32>} : memref<2x64xf32, #tpu.memory_space<vmem>>, vector<2x64xf32>,
    %c1_i32 = arith.constant 1 : i32
    %9 = arith.cmpi eq, %arg0, %c1_i32 : i32
    %10 = arith.extui %9 : i1 to i32
    %c0_i32_8 = arith.constant 0 : i32
    %11 = arith.cmpi ne, %10, %c0_i32_8 : i32
    scf.if %11 {
      %c0_9 = arith.constant 0 : index
      %c0_10 = arith.constant 0 : index
      %12 = vector.load %arg9[%c0_9, %c0_10] : memref<2x64xf32, #tpu.memory_space<vmem>>, vector<2x64xf32>
      %c0_11 = arith.constant 0 : index
      %c0_12 = arith.constant 0 : index
      %13 = vector.load %arg3[%c0_11, %c0_12] : memref<1x64xf32, #tpu.memory_space<vmem>>, vector<1x64xf32>
      %14 = vector.broadcast %13 : vector<1x64xf32> to vector<2x64xf32>
      %15 = arith.addf %12, %14 : vector<2x64xf32>
      %cst_13 = arith.constant 0.000000e+00 : f32
      %16 = vector.broadcast %cst_13 : f32 to vector<2x64xf32>
      %17 = arith.maximumf %15, %16 : vector<2x64xf32>
      %18 = arith.truncf %17 : vector<2x64xf32> to vector<2x64xbf16>
      %c0_14 = arith.constant 0 : index
      %c0_15 = arith.constant 0 : index
      %19 = vector.load %arg4[%c0_14, %c0_15] : memref<64x32xbf16, #tpu.memory_space<vmem>>, vector<64x32xbf16>
      %cst_16 = arith.constant dense<0.000000e+00> : vector<2x32xf32>
      %20 = tpu.matmul %18, %19, %cst_16 {dimension_numbers = #tpu.dot_dimension_numbers<[1], [0], [0], [1], [0, 0, 1, 1], [], []>} : vector<2x64xbf16>, vector<64x32xbf16>, vector<2x32xf32> -> vector<2x32xf32>
      %c0_17 = arith.constant 0 : index
      %c0_18 = arith.constant 0 : index
      %21 = vector.load %arg5[%c0_17, %c0_18] : memref<1x32xf32, #tpu.memory_space<vmem>>, vector<1x32xf32>
      %22 = vector.broadcast %21 : vector<1x32xf32> to vector<2x32xf32>
      %23 = arith.addf %20, %22 : vector<2x32xf32>
      %cst_19 = arith.constant 0.000000e+00 : f32
      %24 = vector.broadcast %cst_19 : f32 to vector<2x32xf32>
      %25 = arith.maximumf %23, %24 : vector<2x32xf32>
      %26 = arith.truncf %25 : vector<2x32xf32> to vector<2x32xbf16>
      %c0_20 = arith.constant 0 : index
      %c0_21 = arith.constant 0 : index
      %27 = vector.load %arg6[%c0_20, %c0_21] : memref<32x4xbf16, #tpu.memory_space<vmem>>, vector<32x4xbf16>
      %cst_22 = arith.constant dense<0.000000e+00> : vector<2x4xf32>
      %28 = tpu.matmul %26, %27, %cst_22 {dimension_numbers = #tpu.dot_dimension_numbers<[1], [0], [0], [1], [0, 0, 1, 1], [], []>} : vector<2x32xbf16>, vector<32x4xbf16>, vector<2x4xf32> -> vector<2x4xf32>
      %c0_23 = arith.constant 0 : index
      %c0_24 = arith.constant 0 : index
      %29 = vector.load %arg7[%c0_23, %c0_24] : memref<1x4xf32, #tpu.memory_space<vmem>>, vector<1x4xf32>
      %30 = vector.broadcast %29 : vector<1x4xf32> to vector<2x4xf32>
      %31 = arith.addf %28, %30 : vector<2x4xf32>
      %c0_25 = arith.constant 0 : index
      %c0_26 = arith.constant 0 : index
      %32 = vector.load %arg8[%c0_25, %c0_26] : memref<2x4xf32, #tpu.memory_space<vmem>>, vector<2x4xf32>
      tpu.vector_store %arg8[%c0_25, %c0_26], %31 {strides = array<i32>} : memref<2x4xf32, #tpu.memory_space<vmem>>, vector<2x4xf32>,
    } else {
    }
    return
  }
  func.func @transform_0(%arg0: i32) -> (i32, i32) {
    %c0_i32 = arith.constant 0 : i32
    %c0_i32_0 = arith.constant 0 : i32
    return %c0_i32, %arg0 : i32, i32
  }
  func.func @transform_1(%arg0: i32) -> (i32, i32) {
    %c0_i32 = arith.constant 0 : i32
    %c0_i32_0 = arith.constant 0 : i32
    return %arg0, %c0_i32 : i32, i32
  }
  func.func @transform_2(%arg0: i32) -> (i32, i32) {
    %c0_i32 = arith.constant 0 : i32
    %c0_i32_0 = arith.constant 0 : i32
    %c0_i32_1 = arith.constant 0 : i32
    return %c0_i32, %c0_i32_0 : i32, i32
  }
  func.func @transform_3(%arg0: i32) -> (i32, i32) {
    %c0_i32 = arith.constant 0 : i32
    %c0_i32_0 = arith.constant 0 : i32
    %c0_i32_1 = arith.constant 0 : i32
    return %c0_i32, %c0_i32_0 : i32, i32
  }
  func.func @transform_4(%arg0: i32) -> (i32, i32) {
    %c0_i32 = arith.constant 0 : i32
    %c0_i32_0 = arith.constant 0 : i32
    %c0_i32_1 = arith.constant 0 : i32
    return %c0_i32, %c0_i32_0 : i32, i32
  }
  func.func @transform_5(%arg0: i32) -> (i32, i32) {
    %c0_i32 = arith.constant 0 : i32
    %c0_i32_0 = arith.constant 0 : i32
    %c0_i32_1 = arith.constant 0 : i32
    return %c0_i32, %c0_i32_0 : i32, i32
  }
  func.func @transform_6(%arg0: i32) -> (i32, i32) {
    %c0_i32 = arith.constant 0 : i32
    %c0_i32_0 = arith.constant 0 : i32
    %c0_i32_1 = arith.constant 0 : i32
    return %c0_i32, %c0_i32_0 : i32, i32
  }
  func.func @transform_7(%arg0: i32) -> (i32, i32) {
    %c0_i32 = arith.constant 0 : i32
    %c0_i32_0 = arith.constant 0 : i32
    %c0_i32_1 = arith.constant 0 : i32
    return %c0_i32, %c0_i32_0 : i32, i32
  }
}

</mosaic_0001>

<bundles_post_ra>
// kernel: predic_model_forward.5
= control target key start
LH: loop header
LB: loop body
LE: loop exit
PB: predicated region body
PF: predicated region fallthrough
CT: control target
= control target key end

     0   :  { %s775_s12 = smov 0   ;;  %s939_s0 = inlined_call_operand.vmem [shape: bf16[512,27], index: 0, kind: input, shape index: {}]   ;;  %s940_s1 = inlined_call_operand.vmem [shape: bf16[27,32], index: 1, kind: input, shape index: {}]   ;;  %s941_s2 = inlined_call_operand.vmem [shape: f32[1,32], index: 2, kind: input, shape index: {}]   ;;  %s942_s3 = inlined_call_operand.vmem [shape: f32[512,32], index: 3, kind: output, shape index: {}]  }
   0x1 LB: > { %s615_s13 = sadd.s32 4294967295, %s752_s12   ;;  %p619_p0 = scmp.ge.s32.totalorder %s752_s12, 1  ;;  %s752_s12 = sphi %s775_s12, %s13_s12  }
   0x2   : > { %p138_p1 = scmp.lt.s32.totalorder %s752_s12, 3 }
   0x4   : > { %p139_p2 = pnand %p619_p0, %p138_p1 }
   0x5   : > { %s620_s16 = sshll.u32 (!%p139_p2), %s615_s13, 5 }
   0x6   : > { %142 = sbr.rel (%p139_p2) target bundleno = 250 (0xfa), region = 32  ;;  %p163_p3 = scmp.lt.s32.totalorder (!%p139_p2), %s620_s16, 63 }
   0xb   : > { %v728_v0 = vld [vmem:[%s940_s1 + $0x8] sm:$0x3f]   ;;  %vm358_vm0 = vcmask 1044480   ;;  %vm359_vm1 = vcmask 1045504   ;;  %v754_v1 = vmov 65535   ;;  %v729_v5 = vld [vmem:[%s940_s1] sm:$0xff]  }
   0xc   : > { %v360_v2 = vsel %vm358_vm0, 4294967295, %v754_v1  ;;  %s944_s16 = smov (!%p163_p3, %s620_s16), 63  ;;  %vm309_vm2 = vcmask 220160   ;;  %v833_v22 = vld [vmem:[%s941_s2] ss:$0 sm:$0xff]  ;;  %vm526_vm3 = vcmask 261120  }
   0xd   : > { %v361_v3 = vsel %vm359_vm1, %v360_v2, 0  ;;  %s621_s19 = sshll.u32 %s944_s16, 2  ;;  %s623_s23 = sshll.u32 %s944_s16, 3 }
   0xe   : > { %v363_v4 = vand.u32 %v728_v0, %v361_v3  ;;  %s795_s22 = scalar_lea.vmem %s939_s0, %s621_s19  ;;  %s838_s28 = scalar_lea.vmem %s942_s3, %s623_s23 }
   0xf   : > { %v730_v6 = vld [vmem:[%s795_s22] sm:$0xff]   ;;  %v732_v8 = vld [vmem:[%s795_s22 + $0x8] sm:$0xff]   ;;  %v734_v10 = vld [vmem:[%s795_s22 + $0x10] sm:$0xff]  }
  0x10   : > { %679 = vmatprep.subr.bf16.mxu0 %v363_v4  ;;  %715 = vmatprep.subr.bf16.mxu1 %v363_v4  ;;  %v731_v7 = vld [vmem:[%s795_s22 + $0x40] sm:$0xff]   ;;  %v733_v9 = vld [vmem:[%s795_s22 + $0x48] sm:$0xff]   ;;  %v735_v11 = vld [vmem:[%s795_s22 + $0x50] sm:$0xff]  }
  0x11   : > { %680 = vmatpush3.bf16.msra.mxu0 %v363_v4  ;;  %717 = vmatpush3.bf16.msra.mxu1 %v363_v4  ;;  %v736_v12 = vld [vmem:[%s795_s22 + $0x18] sm:$0xff]   ;;  %v738_v14 = vld [vmem:[%s795_s22 + $0x20] sm:$0xff]   ;;  %v740_v16 = vld [vmem:[%s795_s22 + $0x28] sm:$0xff]  }
  0x12   : > { %681 = vmatprep.subr.bf16.mxu0 %v729_v5  ;;  %716 = vmatprep.subr.bf16.mxu1 %v729_v5  ;;  %v737_v13 = vld [vmem:[%s795_s22 + $0x58] sm:$0xff]   ;;  %v739_v15 = vld [vmem:[%s795_s22 + $0x60] sm:$0xff]   ;;  %v741_v17 = vld [vmem:[%s795_s22 + $0x68] sm:$0xff]  }
  0x13   : > { %683 = vmatprep.mubr.msk.bf16.mxu0 %vm309_vm2, %v730_v6  ;;  %699 = vmatprep.mubr.msk.bf16.mxu1 %vm309_vm2, %v731_v7  ;;  %v742_v18 = vld [vmem:[%s795_s22 + $0x30] sm:$0xff]   ;;  %v744_v20 = vld [vmem:[%s795_s22 + $0x38] sm:$0xff]  }
  0x14   : > { %v743_v19 = vld [vmem:[%s795_s22 + $0x70] sm:$0xff]   ;;  %v745_v21 = vld [vmem:[%s795_s22 + $0x78] sm:$0xff]  }
  0x15   : > { %682 = vmatpush3.bf16.msra.mxu0 %v729_v5  ;;  %718 = vmatpush3.bf16.msra.mxu1 %v729_v5 }
  0x18   : > { %684 = vmatmul.mubr.msk.bf16.vlgmr.msra.gmra.mxu0 %vm309_vm2, %v732_v8  ;;  %700 = vmatmul.mubr.msk.bf16.vlgmr.msra.gmra.mxu1 %vm309_vm2, %v733_v9 }
  0x19   : > { %687 = vmatprep.mubr.msk.bf16.mxu0 %vm309_vm2, %v734_v10  ;;  %703 = vmatprep.mubr.msk.bf16.mxu1 %vm309_vm2, %v735_v11 }
  0x20   : > { %688 = vmatmul.mubr.msk.bf16.gmra.mxu0 %vm309_vm2, %v736_v12  ;;  %704 = vmatmul.mubr.msk.bf16.gmra.mxu1 %vm309_vm2, %v737_v13 }
  0x21   : > { %691 = vmatprep.mubr.msk.bf16.mxu0 %vm309_vm2, %v738_v14  ;;  %707 = vmatprep.mubr.msk.bf16.mxu1 %vm309_vm2, %v739_v15 }
  0x28   : > { %692 = vmatmul.mubr.msk.bf16.gmra.mxu0 %vm309_vm2, %v740_v16  ;;  %708 = vmatmul.mubr.msk.bf16.gmra.mxu1 %vm309_vm2, %v741_v17 }
  0x29   : > { %695 = vmatprep.mubr.msk.bf16.mxu0 %vm309_vm2, %v742_v18  ;;  %711 = vmatprep.mubr.msk.bf16.mxu1 %vm309_vm2, %v743_v19 }
  0x30   : > { %696 = vmatmul.mubr.msk.bf16.gmra.mxu0 %vm309_vm2, %v744_v20  ;;  %712 = vmatmul.mubr.msk.bf16.gmra.mxu1 %vm309_vm2, %v745_v21 }
  0xd8   : > { %v685_v23 = vpop.f32.mrf.mxu0  ;;  %v701_v24 = vpop.f32.mrf.mxu1 }
  0xd9   : > { %v408_v25 = vadd.f32 %v685_v23, %v833_v22  ;;  %v472_v26 = vadd.f32 %v701_v24, %v833_v22 }
  0xda   : > { %v399_v27 = vpop.f32.mrf.mxu0  ;;  %v463_v28 = vpop.f32.mrf.mxu1 }
  0xdb   : > { %529 = vst.msk [vmem:[%s838_s28 + $0x10] sm:$0xff] %vm526_vm3, %v408_v25  ;;  %545 = vst.msk [vmem:[%s838_s28 + $0x90] sm:$0xff] %vm526_vm3, %v472_v26  ;;  %v400_v29 = vadd.f32 %v833_v22, %v399_v27  ;;  %v464_v30 = vadd.f32 %v833_v22, %v463_v28 }
  0xdc   : > { %v686_v31 = vpop.f32.mrf.mxu0  ;;  %v702_v32 = vpop.f32.mrf.mxu1 }
  0xdd   : > { %527 = vst.msk [vmem:[%s838_s28] sm:$0xff] %vm526_vm3, %v400_v29  ;;  %543 = vst.msk [vmem:[%s838_s28 + $0x80] sm:$0xff] %vm526_vm3, %v464_v30  ;;  %v411_v33 = vadd.f32 %v686_v31, %v833_v22  ;;  %v475_v34 = vadd.f32 %v702_v32, %v833_v22 }
  0xde   : > { %v402_v35 = vpop.f32.mrf.mxu0  ;;  %v466_v36 = vpop.f32.mrf.mxu1 }
  0xdf   : > { %530 = vst.msk [vmem:[%s838_s28 + $0x18] sm:$0xff] %vm526_vm3, %v411_v33  ;;  %546 = vst.msk [vmem:[%s838_s28 + $0x98] sm:$0xff] %vm526_vm3, %v475_v34  ;;  %v403_v37 = vadd.f32 %v833_v22, %v402_v35  ;;  %v467_v38 = vadd.f32 %v833_v22, %v466_v36 }
  0xe0   : > { %v689_v39 = vpop.f32.mrf.mxu0  ;;  %v705_v40 = vpop.f32.mrf.mxu1 }
  0xe1   : > { %528 = vst.msk [vmem:[%s838_s28 + $0x8] sm:$0xff] %vm526_vm3, %v403_v37  ;;  %544 = vst.msk [vmem:[%s838_s28 + $0x88] sm:$0xff] %vm526_vm3, %v467_v38  ;;  %v424_v41 = vadd.f32 %v689_v39, %v833_v22  ;;  %v488_v42 = vadd.f32 %v705_v40, %v833_v22 }
  0xe2   : > { %v415_v43 = vpop.f32.mrf.mxu0  ;;  %v479_v44 = vpop.f32.mrf.mxu1 }
  0xe3   : > { %533 = vst.msk [vmem:[%s838_s28 + $0x30] sm:$0xff] %vm526_vm3, %v424_v41  ;;  %549 = vst.msk [vmem:[%s838_s28 + $0xb0] sm:$0xff] %vm526_vm3, %v488_v42  ;;  %v416_v45 = vadd.f32 %v833_v22, %v415_v43  ;;  %v480_v46 = vadd.f32 %v833_v22, %v479_v44 }
  0xe4   : > { %v690_v47 = vpop.f32.mrf.mxu0  ;;  %v706_v48 = vpop.f32.mrf.mxu1 }
  0xe5   : > { %531 = vst.msk [vmem:[%s838_s28 + $0x20] sm:$0xff] %vm526_vm3, %v416_v45  ;;  %547 = vst.msk [vmem:[%s838_s28 + $0xa0] sm:$0xff] %vm526_vm3, %v480_v46  ;;  %v427_v49 = vadd.f32 %v690_v47, %v833_v22  ;;  %v491_v50 = vadd.f32 %v706_v48, %v833_v22 }
  0xe6   : > { %v418_v51 = vpop.f32.mrf.mxu0  ;;  %v482_v52 = vpop.f32.mrf.mxu1 }
  0xe7   : > { %534 = vst.msk [vmem:[%s838_s28 + $0x38] sm:$0xff] %vm526_vm3, %v427_v49  ;;  %550 = vst.msk [vmem:[%s838_s28 + $0xb8] sm:$0xff] %vm526_vm3, %v491_v50  ;;  %v419_v53 = vadd.f32 %v833_v22, %v418_v51  ;;  %v483_v54 = vadd.f32 %v833_v22, %v482_v52 }
  0xe8   : > { %v693_v55 = vpop.f32.mrf.mxu0  ;;  %v709_v56 = vpop.f32.mrf.mxu1 }
  0xe9   : > { %532 = vst.msk [vmem:[%s838_s28 + $0x28] sm:$0xff] %vm526_vm3, %v419_v53  ;;  %548 = vst.msk [vmem:[%s838_s28 + $0xa8] sm:$0xff] %vm526_vm3, %v483_v54  ;;  %v440_v57 = vadd.f32 %v693_v55, %v833_v22  ;;  %v504_v58 = vadd.f32 %v709_v56, %v833_v22 }
  0xea   : > { %v431_v59 = vpop.f32.mrf.mxu0  ;;  %v495_v60 = vpop.f32.mrf.mxu1 }
  0xeb   : > { %537 = vst.msk [vmem:[%s838_s28 + $0x50] sm:$0xff] %vm526_vm3, %v440_v57  ;;  %553 = vst.msk [vmem:[%s838_s28 + $0xd0] sm:$0xff] %vm526_vm3, %v504_v58  ;;  %v432_v61 = vadd.f32 %v833_v22, %v431_v59  ;;  %v496_v62 = vadd.f32 %v833_v22, %v495_v60 }
  0xec   : > { %v694_v63 = vpop.f32.mrf.mxu0  ;;  %v710_v0 = vpop.f32.mrf.mxu1 }
  0xed   : > { %535 = vst.msk [vmem:[%s838_s28 + $0x40] sm:$0xff] %vm526_vm3, %v432_v61  ;;  %551 = vst.msk [vmem:[%s838_s28 + $0xc0] sm:$0xff] %vm526_vm3, %v496_v62  ;;  %v443_v1 = vadd.f32 %v694_v63, %v833_v22  ;;  %v507_v2 = vadd.f32 %v710_v0, %v833_v22 }
  0xee   : > { %v434_v3 = vpop.f32.mrf.mxu0  ;;  %v498_v4 = vpop.f32.mrf.mxu1 }
  0xef   : > { %538 = vst.msk [vmem:[%s838_s28 + $0x58] sm:$0xff] %vm526_vm3, %v443_v1  ;;  %554 = vst.msk [vmem:[%s838_s28 + $0xd8] sm:$0xff] %vm526_vm3, %v507_v2  ;;  %v435_v5 = vadd.f32 %v833_v22, %v434_v3  ;;  %v499_v6 = vadd.f32 %v833_v22, %v498_v4 }
  0xf0   : > { %v697_v7 = vpop.f32.mrf.mxu0  ;;  %v713_v8 = vpop.f32.mrf.mxu1 }
  0xf1   : > { %536 = vst.msk [vmem:[%s838_s28 + $0x48] sm:$0xff] %vm526_vm3, %v435_v5  ;;  %552 = vst.msk [vmem:[%s838_s28 + $0xc8] sm:$0xff] %vm526_vm3, %v499_v6  ;;  %v456_v9 = vadd.f32 %v697_v7, %v833_v22  ;;  %v520_v10 = vadd.f32 %v713_v8, %v833_v22 }
  0xf2   : > { %v447_v11 = vpop.f32.mrf.mxu0  ;;  %v511_v12 = vpop.f32.mrf.mxu1 }
  0xf3   : > { %541 = vst.msk [vmem:[%s838_s28 + $0x70] sm:$0xff] %vm526_vm3, %v456_v9  ;;  %557 = vst.msk [vmem:[%s838_s28 + $0xf0] sm:$0xff] %vm526_vm3, %v520_v10  ;;  %v448_v13 = vadd.f32 %v833_v22, %v447_v11  ;;  %v512_v14 = vadd.f32 %v833_v22, %v511_v12 }
  0xf4   : > { %v698_v15 = vpop.f32.mrf.mxu0  ;;  %v714_v16 = vpop.f32.mrf.mxu1 }
  0xf5   : > { %539 = vst.msk [vmem:[%s838_s28 + $0x60] sm:$0xff] %vm526_vm3, %v448_v13  ;;  %555 = vst.msk [vmem:[%s838_s28 + $0xe0] sm:$0xff] %vm526_vm3, %v512_v14  ;;  %v459_v17 = vadd.f32 %v698_v15, %v833_v22  ;;  %v523_v18 = vadd.f32 %v714_v16, %v833_v22 }
  0xf6   : > { %v450_v19 = vpop.f32.mrf.mxu0  ;;  %v514_v20 = vpop.f32.mrf.mxu1 }
  0xf7   : > { %542 = vst.msk [vmem:[%s838_s28 + $0x78] sm:$0xff] %vm526_vm3, %v459_v17  ;;  %558 = vst.msk [vmem:[%s838_s28 + $0xf8] sm:$0xff] %vm526_vm3, %v523_v18  ;;  %v451_v21 = vadd.f32 %v833_v22, %v450_v19  ;;  %v515_v23 = vadd.f32 %v833_v22, %v514_v20 }
  0xf9   : > { %540 = vst.msk [vmem:[%s838_s28 + $0x68] sm:$0xff] %vm526_vm3, %v451_v21  ;;  %556 = vst.msk [vmem:[%s838_s28 + $0xe8] sm:$0xff] %vm526_vm3, %v515_v23 }
  0xfa PF: > { %s13_s12 = sadd.s32 1, %s752_s12  }
  0xfb   : > { %p10_p4 = scmp.ge.s32.totalorder %s13_s12, 4  }
  0xfd   :  { %12 = sbr.rel (!%p10_p4) target bundleno = 1 (0x1), region = 62 }

// kernel: predic_model_forward.6
= control target key start
LH: loop header
LB: loop body
LE: loop exit
PB: predicated region body
PF: predicated region fallthrough
CT: control target
= control target key end

     0   :  { %s523_s12 = smov 0   ;;  %s563_s0 = inlined_call_operand.vmem [shape: f32[4,32,128], index: 0, kind: input, shape index: {}]   ;;  %s564_s1 = inlined_call_operand.vmem [shape: bf16[32,72], index: 1, kind: input, shape index: {}]   ;;  %s565_s2 = inlined_call_operand.vmem [shape: f32[9,128], index: 2, kind: input, shape index: {}]   ;;  %s566_s3 = inlined_call_operand.vmem [shape: bf16[4,8,128], index: 3, kind: output, shape index: {}]  }
   0x1 LB: > { %s409_s13 = sadd.s32 4294967295, %s492_s12   ;;  %p413_p0 = scmp.ge.s32.totalorder %s492_s12, 1  ;;  %s492_s12 = sphi %s523_s12, %s13_s12  }
   0x2   : > { %p137_p1 = scmp.lt.s32.totalorder %s492_s12, 5 }
   0x4   : > { %p138_p2 = pnand %p413_p0, %p137_p1 }
   0x5   : > { %p160_p3 = scmp.lt.s32.totalorder (!%p138_p2), %s409_s13, 3  ;;  %p417_p4 = scmp.ne.s32.totalorder (!%p138_p2), %s409_s13, 0 }
   0x6   : > { %141 = sbr.rel (%p138_p2) target bundleno = 421 (0x1a5), region = 32 }
   0xb   : > { %s161_s14 = scalar_select %p160_p3, %s409_s13, 3 }
   0xc   : > { %173 = sbr.rel (%p417_p4) target bundleno = 19 (0x13), region = 36 }
   0xd   : > { %s428_s15 = sshll.u32 %s161_s14, 5  ;;  %s416_s16 = sshll.u32 %s161_s14, 2 }
   0xe   : > { %s534_s19 = scalar_lea.vmem %s563_s0, %s428_s15  ;;  %s539_s22 = scalar_lea.vmem %s566_s3, %s416_s16 }
  0x11   : > { %v494_v0 = vmov 0.0  }
  0x12   : > { %174 = vst [vmem:[#allocation2] sm:$0xff] %v494_v0  ;;  %175 = vst [vmem:[#allocation3] sm:$0xff] %v494_v0 }
  0x13 PF: > { %s495_s23 = smov 119   ;;  %s496_s24 = smov 120   ;;  %v468_v2 = vld [vmem:[%s564_s1] sm:$0xff]   ;;  %vm263_vm0 = vcmask 588800   ;;  %v181_v3 = vlaneseq  ;;  %v418_v10 = vld [vmem:[%s565_s2 + $0x8] ss:$0 sm:$0xff] }
  0x14   : > { %s497_s25 = smov 121   ;;  %s498_s26 = smov 127   ;;  %446 = vmatprep.mubr.msk.bf16.mxu0 %vm263_vm0, %v468_v2  ;;  %v177_v7 = vld [vmem:[%s565_s2] sm:$0xff]  ;;  %vm270_vm1 = vcmask 1043456   ;;  %v469_v46 = vld [vmem:[%s564_s1 + $0x8] sm:$0xff]   ;;  %v247_v57 = vld [vmem:[%s534_s19 + $0x10] sm:$0xff] }
  0x15   : > { %s499_s27 = smov 1   ;;  %s500_s28 = smov 7   ;;  %v182_v4 = vshrl.u32 %v181_v3, 7  ;;  %v245_v48 = vld [vmem:[%s534_s19] sm:$0xff]  ;;  %v246_v52 = vld [vmem:[%s534_s19 + $0x8] sm:$0xff]  ;;  %v248_v59 = vld [vmem:[%s534_s19 + $0x18] sm:$0xff] }
  0x16   : > { %s501_s4 = smov 8   ;;  %s502_s5 = smov 9  }
  0x17   : > { %v230_v5 = vsub.s32 7, %v182_v4  ;;  %v209_v6 = vsub.s32 4, %v182_v4  ;;  %v223_v8 = vsub.s32 6, %v182_v4  ;;  %v216_v9 = vsub.s32 5, %v182_v4 }
  0x18   : > { %v204_v15 = vsub.s32 3, %v182_v4  ;;  %v197_v19 = vsub.s32 2, %v182_v4  ;;  %v190_v26 = vsub.s32 1, %v182_v4  ;;  %v183_v27 = vsub.s32 0, %v182_v4 }
  0x19   : > { %v176_v1 = vld [vmem:[#allocation2] sm:$0xff]  ;;  %v231_v11 = vrot.slane %v177_v7, %v230_v5  ;;  %v210_v12 = vrot.slane %v177_v7, %v209_v6  ;;  %v224_v17 = vrot.slane %v177_v7, %v223_v8  ;;  %v217_v18 = vrot.slane %v177_v7, %v216_v9  ;;  %v346_v4 = vld [vmem:[#allocation3] sm:$0xff] }
  0x1a   : > { %233 = vrot.lane.b32.xlu0 %v176_v1, %s495_s23  ;;  %226 = vrot.lane.b32.xlu1 %v176_v1, %s496_s24  ;;  %v205_v25 = vrot.slane %v177_v7, %v204_v15  ;;  %v198_v31 = vrot.slane %v177_v7, %v197_v19  ;;  %v191_v38 = vrot.slane %v177_v7, %v190_v26 }
  0x1b   : > { %v211_v22 = vmul.f32 %v210_v12, %v176_v1  ;;  %v184_v39 = vrot.slane %v177_v7, %v183_v27 }
  0x1e   : > { %219 = vrot.lane.b32.xlu0 %v176_v1, %s497_s25  ;;  %212 = vrot.lane.b32.xlu1 %v176_v1, %s498_s26 }
  0x22   : > { %200 = vrot.lane.b32.xlu1 %v176_v1, %s499_s27  ;;  %193 = vrot.lane.b32.xlu0 %v176_v1, %s500_s28 }
  0x26   : > { %186 = vrot.lane.b32.xlu1 %v176_v1, %s501_s4  ;;  %179 = vrot.lane.b32.xlu0 %v176_v1, %s502_s5 }
  0x8c   : > { %v234_v13 = vpop.permute.xlu0 %233  ;;  %v227_v14 = vpop.permute.xlu1 %226 }
  0x8d   : > { %v239_v16 = vmul.f32 %v418_v10, %v234_v13  ;;  %v232_v21 = vmul.f32 %v231_v11, %v227_v14 }
  0x8f   : > { %v244_v20 = vpack.c.bf16 %v239_v16, %v239_v16 }
  0x90   : > { %v220_v23 = vpop.permute.xlu0 %219  ;;  %v213_v24 = vpop.permute.xlu1 %212 }
  0x91   : > { %v225_v28 = vmul.f32 %v224_v17, %v220_v23  ;;  %450 = vmatprep.subr.msk.bf16.mxu0 %vm270_vm1, %v244_v20  ;;  %v272_v29 = vsel %vm270_vm1, %v244_v20, 0  ;;  %v218_v30 = vmul.f32 %v217_v18, %v213_v24 }
  0x92   : > { %437 = vmatpush3.bf16.msra.mxu0 %v272_v29 }
  0x93   : > { %v243_v32 = vpack.c.bf16 %v232_v21, %v225_v28  ;;  %v242_v33 = vpack.c.bf16 %v218_v30, %v211_v22 }
  0x94   : > { %v201_v34 = vpop.permute.xlu1 %200  ;;  %v194_v35 = vpop.permute.xlu0 %193 }
  0x95   : > { %438 = vmatprep.subr.bf16.mxu0 %v243_v32  ;;  %v206_v36 = vmul.f32 %v205_v25, %v201_v34  ;;  %v199_v37 = vmul.f32 %v198_v31, %v194_v35 }
  0x96   : > { %439 = vmatpush3.bf16.msra.mxu0 %v243_v32 }
  0x97   : > { %v241_v40 = vpack.c.bf16 %v206_v36, %v199_v37  ;;  %440 = vmatprep.subr.bf16.mxu0 %v242_v33 }
  0x98   : > { %v187_v41 = vpop.permute.xlu1 %186  ;;  %v180_v42 = vpop.permute.xlu0 %179 }
  0x99   : > { %v192_v43 = vmul.f32 %v191_v38, %v187_v41  ;;  %v185_v44 = vmul.f32 %v184_v39, %v180_v42 }
  0x9a   : > { %441 = vmatpush3.bf16.msra.mxu0 %v242_v33 }
  0x9b   : > { %v240_v45 = vpack.c.bf16 %v192_v43, %v185_v44  ;;  %442 = vmatprep.subr.bf16.mxu0 %v241_v40 }
  0x9e   : > { %443 = vmatpush3.bf16.msra.mxu0 %v241_v40 }
  0x9f   : > { %444 = vmatprep.subr.bf16.mxu0 %v240_v45 }
  0xa2   : > { %445 = vmatpush3.bf16.msra.mxu0 %v240_v45 }
  0xa5   : > { %447 = vmatmul.mubr.msk.bf16.vlgmr.msra.gmra.mxu0 %vm263_vm0, %v469_v46 }
 0x165   : > { %v448_v47 = vpop.f32.mrf.mxu0 }
 0x166   : > { %v325_v58 = vadd.f32 %v448_v47, %v247_v57 }
 0x167   : > { %v308_v49 = vpop.f32.mrf.mxu0 }
 0x168   : > { %v323_v50 = vadd.f32 %v308_v49, %v245_v48  ;;  %v425_v61 = vmul.f32 -1.442695, %v325_v58 }
 0x169   : > { %v449_v51 = vpop.f32.mrf.mxu0 }
 0x16a   : > { %v423_v53 = vmul.f32 -1.442695, %v323_v50  ;;  %v326_v63 = vadd.f32 %v449_v51, %v248_v59 }
 0x16b   : > { %v311_v54 = vpop.f32.mrf.mxu0 }
 0x16c   : > { %470 = vpow2.f32 %v423_v53  ;;  %v324_v55 = vadd.f32 %v311_v54, %v246_v52 }
 0x16e   : > { %v424_v56 = vmul.f32 -1.442695, %v324_v55 }
 0x170   : > { %472 = vpow2.f32 %v424_v56 }
 0x171   : > { %474 = vpow2.f32 %v425_v61 }
 0x179   : > { %v471_v60 = vpop.eup %470 }
 0x17a   : > { %v330_v62 = vadd.f32 1.0, %v471_v60 }
 0x17c   : > { %476 = vrcp.f32 %v330_v62 }
 0x17d   : > { %v473_v0 = vpop.eup %472  ;;  %478 = vtanh.f32 %v326_v63 }
 0x17e   : > { %v336_v1 = vadd.f32 1.0, %v473_v0  ;;  %v475_v2 = vpop.eup %474 }
 0x17f   : > { %v342_v7 = vadd.f32 1.0, %v475_v2 }
 0x180   : > { %480 = vrcp.f32 %v336_v1 }
 0x181   : > { %482 = vrcp.f32 %v342_v7 }
 0x189   : > { %v477_v3 = vpop.eup %476 }
 0x18a   : > { %v479_v5 = vpop.eup %478 }
 0x18b   : > { %v348_v8 = vmul.f32 %v479_v5, %v477_v3 }
 0x18d   : > { %v481_v6 = vpop.eup %480 }
 0x18e   : > { %v347_v9 = vmul.f32 %v481_v6, %v346_v4  ;;  %v483_v11 = vpop.eup %482 }
 0x190   : > { %v349_v10 = vadd.f32 %v348_v8, %v347_v9 }
 0x192   : > { %484 = vtanh.f32 %v349_v10  ;;  %352 = vst [vmem:[#allocation3] sm:$0xff] %v349_v10 }
 0x19f   : > { %v485_v12 = vpop.eup %484 }
 0x1a0   : > { %v351_v13 = vmul.f32 %v485_v12, %v483_v11 }
 0x1a2   : > { %353 = vst [vmem:[#allocation2] sm:$0xff] %v351_v13  ;;  %v354_v14 = vpack.c.bf16 %v351_v13, %v351_v13 }
 0x1a4   : > { %355 = vst [vmem:[%s539_s22] sm:$0xf] %v354_v14 }
 0x1a5 PF: > { %s13_s12 = sadd.s32 1, %s492_s12  }
 0x1a6   : > { %p10_p5 = scmp.ge.s32.totalorder %s13_s12, 6  }
 0x1a8   :  { %12 = sbr.rel (!%p10_p5) target bundleno = 1 (0x1), region = 66 }

// kernel: predic_model_forward.7
= control target key start
LH: loop header
LB: loop body
LE: loop exit
PB: predicated region body
PF: predicated region fallthrough
CT: control target
= control target key end

     0   :  { %s814_s12 = smov 0   ;;  %s987_s0 = inlined_call_operand.vmem [shape: bf16[512,72], index: 0, kind: input, shape index: {}]   ;;  %s988_s1 = inlined_call_operand.vmem [shape: bf16[72,32], index: 1, kind: input, shape index: {}]   ;;  %s989_s2 = inlined_call_operand.vmem [shape: f32[1,32], index: 2, kind: input, shape index: {}]   ;;  %s990_s3 = inlined_call_operand.vmem [shape: f32[512,32], index: 3, kind: output, shape index: {}]  }
   0x1 LB: > { %s633_s13 = sadd.s32 4294967295, %s792_s12   ;;  %p637_p0 = scmp.ge.s32.totalorder %s792_s12, 1  ;;  %s792_s12 = sphi %s814_s12, %s13_s12  }
   0x2   : > { %p138_p1 = scmp.lt.s32.totalorder %s792_s12, 3 }
   0x4   : > { %p139_p2 = pnand %p637_p0, %p138_p1 }
   0x5   : > { %s638_s18 = sshll.u32 (!%p139_p2), %s633_s13, 5 }
   0x6   : > { %142 = sbr.rel (%p139_p2) target bundleno = 258 (0x102), region = 32  ;;  %p163_p3 = scmp.lt.s32.totalorder (!%p139_p2), %s638_s18, 63 }
   0xb   : > { %v765_v0 = vld [vmem:[%s988_s1 + $0x20] ss:$0 sps:$4 sm:$0xff]   ;;  %vm379_vm0 = vcmask 1043456   ;;  %v766_v1 = vld [vmem:[%s988_s1 + $0x18] sm:$0xff]   ;;  %v767_v3 = vld [vmem:[%s988_s1 + $0x10] sm:$0xff]   ;;  %s992_s18 = smov (!%p163_p3, %s638_s18), 63 }
   0xc   : > { %755 = vmatprep.subr.msk.bf16.mxu0 %vm379_vm0, %v765_v0  ;;  %756 = vmatprep.subr.msk.bf16.mxu1 %vm379_vm0, %v765_v0  ;;  %v381_v2 = vsel %vm379_vm0, %v765_v0, 0  ;;  %v768_v4 = vld [vmem:[%s988_s1 + $0x8] sm:$0xff]   ;;  %s639_s23 = sshll.u32 %s992_s18, 2  ;;  %vm330_vm1 = vcmask 588800   ;;  %v769_v7 = vld [vmem:[%s988_s1] sm:$0xff]   ;;  %s641_s29 = sshll.u32 %s992_s18, 3 }
   0xd   : > { %704 = vmatpush3.bf16.msra.mxu0 %v381_v2  ;;  %750 = vmatpush3.bf16.msra.mxu1 %v381_v2  ;;  %s840_s26 = scalar_lea.vmem %s987_s0, %s639_s23  ;;  %v881_v22 = vld [vmem:[%s989_s2] ss:$0 sm:$0xff]  ;;  %s886_s7 = scalar_lea.vmem %s990_s3, %s641_s29  ;;  %vm544_vm2 = vcmask 261120  }
   0xe   : > { %705 = vmatprep.subr.bf16.mxu0 %v766_v1  ;;  %746 = vmatprep.subr.bf16.mxu1 %v766_v1  ;;  %v770_v5 = vld [vmem:[%s840_s26] sm:$0xff]   ;;  %v772_v8 = vld [vmem:[%s840_s26 + $0x8] sm:$0xff]   ;;  %v774_v10 = vld [vmem:[%s840_s26 + $0x10] sm:$0xff]  }
   0xf   : > { %v771_v6 = vld [vmem:[%s840_s26 + $0x40] sm:$0xff]   ;;  %713 = vmatprep.mubr.msk.bf16.mxu0 %vm330_vm1, %v770_v5  ;;  %v773_v9 = vld [vmem:[%s840_s26 + $0x48] sm:$0xff]   ;;  %v775_v11 = vld [vmem:[%s840_s26 + $0x50] sm:$0xff]  }
  0x10   : > { %729 = vmatprep.mubr.msk.bf16.mxu1 %vm330_vm1, %v771_v6  ;;  %v776_v12 = vld [vmem:[%s840_s26 + $0x18] sm:$0xff]   ;;  %v778_v14 = vld [vmem:[%s840_s26 + $0x20] sm:$0xff]   ;;  %v780_v16 = vld [vmem:[%s840_s26 + $0x28] sm:$0xff]  }
  0x11   : > { %706 = vmatpush3.bf16.msra.mxu0 %v766_v1  ;;  %751 = vmatpush3.bf16.msra.mxu1 %v766_v1  ;;  %v777_v13 = vld [vmem:[%s840_s26 + $0x58] sm:$0xff]   ;;  %v779_v15 = vld [vmem:[%s840_s26 + $0x60] sm:$0xff]   ;;  %v781_v17 = vld [vmem:[%s840_s26 + $0x68] sm:$0xff]  }
  0x12   : > { %707 = vmatprep.subr.bf16.mxu0 %v767_v3  ;;  %747 = vmatprep.subr.bf16.mxu1 %v767_v3  ;;  %v782_v18 = vld [vmem:[%s840_s26 + $0x30] sm:$0xff]   ;;  %v784_v20 = vld [vmem:[%s840_s26 + $0x38] sm:$0xff]  }
  0x13   : > { %v783_v19 = vld [vmem:[%s840_s26 + $0x70] sm:$0xff]   ;;  %v785_v21 = vld [vmem:[%s840_s26 + $0x78] sm:$0xff]  }
  0x15   : > { %708 = vmatpush3.bf16.msra.mxu0 %v767_v3  ;;  %752 = vmatpush3.bf16.msra.mxu1 %v767_v3 }
  0x16   : > { %709 = vmatprep.subr.bf16.mxu0 %v768_v4  ;;  %748 = vmatprep.subr.bf16.mxu1 %v768_v4 }
  0x19   : > { %710 = vmatpush3.bf16.msra.mxu0 %v768_v4  ;;  %753 = vmatpush3.bf16.msra.mxu1 %v768_v4 }
  0x1a   : > { %711 = vmatprep.subr.bf16.mxu0 %v769_v7  ;;  %749 = vmatprep.subr.bf16.mxu1 %v769_v7 }
  0x1d   : > { %712 = vmatpush3.bf16.msra.mxu0 %v769_v7  ;;  %754 = vmatpush3.bf16.msra.mxu1 %v769_v7 }
  0x20   : > { %714 = vmatmul.mubr.msk.bf16.vlgmr.msra.gmra.mxu0 %vm330_vm1, %v772_v8  ;;  %730 = vmatmul.mubr.msk.bf16.vlgmr.msra.gmra.mxu1 %vm330_vm1, %v773_v9 }
  0x21   : > { %717 = vmatprep.mubr.msk.bf16.mxu0 %vm330_vm1, %v774_v10  ;;  %733 = vmatprep.mubr.msk.bf16.mxu1 %vm330_vm1, %v775_v11 }
  0x28   : > { %718 = vmatmul.mubr.msk.bf16.gmra.mxu0 %vm330_vm1, %v776_v12  ;;  %734 = vmatmul.mubr.msk.bf16.gmra.mxu1 %vm330_vm1, %v777_v13 }
  0x29   : > { %721 = vmatprep.mubr.msk.bf16.mxu0 %vm330_vm1, %v778_v14  ;;  %737 = vmatprep.mubr.msk.bf16.mxu1 %vm330_vm1, %v779_v15 }
  0x30   : > { %722 = vmatmul.mubr.msk.bf16.gmra.mxu0 %vm330_vm1, %v780_v16  ;;  %738 = vmatmul.mubr.msk.bf16.gmra.mxu1 %vm330_vm1, %v781_v17 }
  0x31   : > { %725 = vmatprep.mubr.msk.bf16.mxu0 %vm330_vm1, %v782_v18  ;;  %741 = vmatprep.mubr.msk.bf16.mxu1 %vm330_vm1, %v783_v19 }
  0x38   : > { %726 = vmatmul.mubr.msk.bf16.gmra.mxu0 %vm330_vm1, %v784_v20  ;;  %742 = vmatmul.mubr.msk.bf16.gmra.mxu1 %vm330_vm1, %v785_v21 }
  0xe0   : > { %v715_v23 = vpop.f32.mrf.mxu0  ;;  %v731_v24 = vpop.f32.mrf.mxu1 }
  0xe1   : > { %v426_v25 = vadd.f32 %v715_v23, %v881_v22  ;;  %v490_v26 = vadd.f32 %v731_v24, %v881_v22 }
  0xe2   : > { %v417_v27 = vpop.f32.mrf.mxu0  ;;  %v481_v28 = vpop.f32.mrf.mxu1 }
  0xe3   : > { %547 = vst.msk [vmem:[%s886_s7 + $0x10] sm:$0xff] %vm544_vm2, %v426_v25  ;;  %563 = vst.msk [vmem:[%s886_s7 + $0x90] sm:$0xff] %vm544_vm2, %v490_v26  ;;  %v418_v29 = vadd.f32 %v881_v22, %v417_v27  ;;  %v482_v30 = vadd.f32 %v881_v22, %v481_v28 }
  0xe4   : > { %v716_v31 = vpop.f32.mrf.mxu0  ;;  %v732_v32 = vpop.f32.mrf.mxu1 }
  0xe5   : > { %545 = vst.msk [vmem:[%s886_s7] sm:$0xff] %vm544_vm2, %v418_v29  ;;  %561 = vst.msk [vmem:[%s886_s7 + $0x80] sm:$0xff] %vm544_vm2, %v482_v30  ;;  %v429_v33 = vadd.f32 %v716_v31, %v881_v22  ;;  %v493_v34 = vadd.f32 %v732_v32, %v881_v22 }
  0xe6   : > { %v420_v35 = vpop.f32.mrf.mxu0  ;;  %v484_v36 = vpop.f32.mrf.mxu1 }
  0xe7   : > { %548 = vst.msk [vmem:[%s886_s7 + $0x18] sm:$0xff] %vm544_vm2, %v429_v33  ;;  %564 = vst.msk [vmem:[%s886_s7 + $0x98] sm:$0xff] %vm544_vm2, %v493_v34  ;;  %v421_v37 = vadd.f32 %v881_v22, %v420_v35  ;;  %v485_v38 = vadd.f32 %v881_v22, %v484_v36 }
  0xe8   : > { %v719_v39 = vpop.f32.mrf.mxu0  ;;  %v735_v40 = vpop.f32.mrf.mxu1 }
  0xe9   : > { %546 = vst.msk [vmem:[%s886_s7 + $0x8] sm:$0xff] %vm544_vm2, %v421_v37  ;;  %562 = vst.msk [vmem:[%s886_s7 + $0x88] sm:$0xff] %vm544_vm2, %v485_v38  ;;  %v442_v41 = vadd.f32 %v719_v39, %v881_v22  ;;  %v506_v42 = vadd.f32 %v735_v40, %v881_v22 }
  0xea   : > { %v433_v43 = vpop.f32.mrf.mxu0  ;;  %v497_v44 = vpop.f32.mrf.mxu1 }
  0xeb   : > { %551 = vst.msk [vmem:[%s886_s7 + $0x30] sm:$0xff] %vm544_vm2, %v442_v41  ;;  %567 = vst.msk [vmem:[%s886_s7 + $0xb0] sm:$0xff] %vm544_vm2, %v506_v42  ;;  %v434_v45 = vadd.f32 %v881_v22, %v433_v43  ;;  %v498_v46 = vadd.f32 %v881_v22, %v497_v44 }
  0xec   : > { %v720_v47 = vpop.f32.mrf.mxu0  ;;  %v736_v48 = vpop.f32.mrf.mxu1 }
  0xed   : > { %549 = vst.msk [vmem:[%s886_s7 + $0x20] sm:$0xff] %vm544_vm2, %v434_v45  ;;  %565 = vst.msk [vmem:[%s886_s7 + $0xa0] sm:$0xff] %vm544_vm2, %v498_v46  ;;  %v445_v49 = vadd.f32 %v720_v47, %v881_v22  ;;  %v509_v50 = vadd.f32 %v736_v48, %v881_v22 }
  0xee   : > { %v436_v51 = vpop.f32.mrf.mxu0  ;;  %v500_v52 = vpop.f32.mrf.mxu1 }
  0xef   : > { %552 = vst.msk [vmem:[%s886_s7 + $0x38] sm:$0xff] %vm544_vm2, %v445_v49  ;;  %568 = vst.msk [vmem:[%s886_s7 + $0xb8] sm:$0xff] %vm544_vm2, %v509_v50  ;;  %v437_v53 = vadd.f32 %v881_v22, %v436_v51  ;;  %v501_v54 = vadd.f32 %v881_v22, %v500_v52 }
  0xf0   : > { %v723_v55 = vpop.f32.mrf.mxu0  ;;  %v739_v56 = vpop.f32.mrf.mxu1 }
  0xf1   : > { %550 = vst.msk [vmem:[%s886_s7 + $0x28] sm:$0xff] %vm544_vm2, %v437_v53  ;;  %566 = vst.msk [vmem:[%s886_s7 + $0xa8] sm:$0xff] %vm544_vm2, %v501_v54  ;;  %v458_v57 = vadd.f32 %v723_v55, %v881_v22  ;;  %v522_v58 = vadd.f32 %v739_v56, %v881_v22 }
  0xf2   : > { %v449_v59 = vpop.f32.mrf.mxu0  ;;  %v513_v60 = vpop.f32.mrf.mxu1 }
  0xf3   : > { %555 = vst.msk [vmem:[%s886_s7 + $0x50] sm:$0xff] %vm544_vm2, %v458_v57  ;;  %571 = vst.msk [vmem:[%s886_s7 + $0xd0] sm:$0xff] %vm544_vm2, %v522_v58  ;;  %v450_v61 = vadd.f32 %v881_v22, %v449_v59  ;;  %v514_v62 = vadd.f32 %v881_v22, %v513_v60 }
  0xf4   : > { %v724_v63 = vpop.f32.mrf.mxu0  ;;  %v740_v0 = vpop.f32.mrf.mxu1 }
  0xf5   : > { %553 = vst.msk [vmem:[%s886_s7 + $0x40] sm:$0xff] %vm544_vm2, %v450_v61  ;;  %569 = vst.msk [vmem:[%s886_s7 + $0xc0] sm:$0xff] %vm544_vm2, %v514_v62  ;;  %v461_v1 = vadd.f32 %v724_v63, %v881_v22  ;;  %v525_v2 = vadd.f32 %v740_v0, %v881_v22 }
  0xf6   : > { %v452_v3 = vpop.f32.mrf.mxu0  ;;  %v516_v4 = vpop.f32.mrf.mxu1 }
  0xf7   : > { %556 = vst.msk [vmem:[%s886_s7 + $0x58] sm:$0xff] %vm544_vm2, %v461_v1  ;;  %572 = vst.msk [vmem:[%s886_s7 + $0xd8] sm:$0xff] %vm544_vm2, %v525_v2  ;;  %v453_v5 = vadd.f32 %v881_v22, %v452_v3  ;;  %v517_v6 = vadd.f32 %v881_v22, %v516_v4 }
  0xf8   : > { %v727_v7 = vpop.f32.mrf.mxu0  ;;  %v743_v8 = vpop.f32.mrf.mxu1 }
  0xf9   : > { %554 = vst.msk [vmem:[%s886_s7 + $0x48] sm:$0xff] %vm544_vm2, %v453_v5  ;;  %570 = vst.msk [vmem:[%s886_s7 + $0xc8] sm:$0xff] %vm544_vm2, %v517_v6  ;;  %v474_v9 = vadd.f32 %v727_v7, %v881_v22  ;;  %v538_v10 = vadd.f32 %v743_v8, %v881_v22 }
  0xfa   : > { %v465_v11 = vpop.f32.mrf.mxu0  ;;  %v529_v12 = vpop.f32.mrf.mxu1 }
  0xfb   : > { %559 = vst.msk [vmem:[%s886_s7 + $0x70] sm:$0xff] %vm544_vm2, %v474_v9  ;;  %575 = vst.msk [vmem:[%s886_s7 + $0xf0] sm:$0xff] %vm544_vm2, %v538_v10  ;;  %v466_v13 = vadd.f32 %v881_v22, %v465_v11  ;;  %v530_v14 = vadd.f32 %v881_v22, %v529_v12 }
  0xfc   : > { %v728_v15 = vpop.f32.mrf.mxu0  ;;  %v744_v16 = vpop.f32.mrf.mxu1 }
  0xfd   : > { %557 = vst.msk [vmem:[%s886_s7 + $0x60] sm:$0xff] %vm544_vm2, %v466_v13  ;;  %573 = vst.msk [vmem:[%s886_s7 + $0xe0] sm:$0xff] %vm544_vm2, %v530_v14  ;;  %v477_v17 = vadd.f32 %v728_v15, %v881_v22  ;;  %v541_v18 = vadd.f32 %v744_v16, %v881_v22 }
  0xfe   : > { %v468_v19 = vpop.f32.mrf.mxu0  ;;  %v532_v20 = vpop.f32.mrf.mxu1 }
  0xff   : > { %560 = vst.msk [vmem:[%s886_s7 + $0x78] sm:$0xff] %vm544_vm2, %v477_v17  ;;  %576 = vst.msk [vmem:[%s886_s7 + $0xf8] sm:$0xff] %vm544_vm2, %v541_v18  ;;  %v469_v21 = vadd.f32 %v881_v22, %v468_v19  ;;  %v533_v23 = vadd.f32 %v881_v22, %v532_v20 }
 0x101   : > { %558 = vst.msk [vmem:[%s886_s7 + $0x68] sm:$0xff] %vm544_vm2, %v469_v21  ;;  %574 = vst.msk [vmem:[%s886_s7 + $0xe8] sm:$0xff] %vm544_vm2, %v533_v23 }
 0x102 PF: > { %s13_s12 = sadd.s32 1, %s792_s12  }
 0x103   : > { %p10_p4 = scmp.ge.s32.totalorder %s13_s12, 4  }
 0x105   :  { %12 = sbr.rel (!%p10_p4) target bundleno = 1 (0x1), region = 62 }

// kernel: predic_model_forward.8
= control target key start
LH: loop header
LB: loop body
LE: loop exit
PB: predicated region body
PF: predicated region fallthrough
CT: control target
= control target key end

     0   :  { %s488_s12 = smov 0   ;;  %s531_s0 = inlined_call_operand.vmem [shape: f32[4,32,128], index: 0, kind: input, shape index: {}]   ;;  %s532_s1 = inlined_call_operand.vmem [shape: bf16[32,72], index: 1, kind: input, shape index: {}]   ;;  %s533_s2 = inlined_call_operand.vmem [shape: f32[9,128], index: 2, kind: input, shape index: {}]   ;;  %s534_s3 = inlined_call_operand.vmem [shape: bf16[8,128], index: 3, kind: output, shape index: {}]  }
   0x1 LB: > { %s494_s13 = sadd.s32 4294967295, %s457_s12   ;;  %p378_p0 = scmp.ge.s32.totalorder %s457_s12, 1  ;;  %s457_s12 = sphi %s488_s12, %s13_s12  }
   0x2   : > { %p132_p1 = scmp.lt.s32.totalorder %s457_s12, 5 }
   0x4   : > { %p133_p2 = pnand %p378_p0, %p132_p1 }
   0x5   : > { %p151_p3 = scmp.lt.s32.totalorder (!%p133_p2), %s494_s13, 3  ;;  %p381_p4 = scmp.ne.s32.totalorder (!%p133_p2), %s494_s13, 0 }
   0x6   : > { %136 = sbr.rel (%p133_p2) target bundleno = 422 (0x1a6), region = 32 }
   0xb   : > { %s152_s14 = scalar_select %p151_p3, %s494_s13, 3 }
   0xc   : > { %160 = sbr.rel (%p381_p4) target bundleno = 19 (0x13), region = 36 }
   0xd   : > { %s393_s15 = sshll.u32 %s152_s14, 5 }
   0xe   : > { %s503_s18 = scalar_lea.vmem %s531_s0, %s393_s15 }
  0x11   : > { %v459_v0 = vmov 0.0  }
  0x12   : > { %161 = vst [vmem:[#allocation2] sm:$0xff] %v459_v0  ;;  %162 = vst [vmem:[#allocation3] sm:$0xff] %v459_v0 }
  0x13 PF: > { %s460_s19 = smov 119   ;;  %s461_s20 = smov 120   ;;  %v433_v2 = vld [vmem:[%s532_s1] sm:$0xff]   ;;  %vm250_vm0 = vcmask 588800   ;;  %v168_v3 = vlaneseq  ;;  %v382_v10 = vld [vmem:[%s533_s2 + $0x8] ss:$0 sm:$0xff] }
  0x14   : > { %s462_s21 = smov 121   ;;  %s463_s22 = smov 127   ;;  %411 = vmatprep.mubr.msk.bf16.mxu0 %vm250_vm0, %v433_v2  ;;  %v164_v7 = vld [vmem:[%s533_s2] sm:$0xff]  ;;  %vm257_vm1 = vcmask 1043456   ;;  %v434_v46 = vld [vmem:[%s532_s1 + $0x8] sm:$0xff]   ;;  %v234_v57 = vld [vmem:[%s503_s18 + $0x10] sm:$0xff] }
  0x15   : > { %s464_s23 = smov 1   ;;  %s465_s24 = smov 7   ;;  %v169_v4 = vshrl.u32 %v168_v3, 7  ;;  %v232_v48 = vld [vmem:[%s503_s18] sm:$0xff]  ;;  %v233_v52 = vld [vmem:[%s503_s18 + $0x8] sm:$0xff]  ;;  %v235_v59 = vld [vmem:[%s503_s18 + $0x18] sm:$0xff] }
  0x16   : > { %s466_s27 = smov 8   ;;  %s467_s28 = smov 9  }
  0x17   : > { %v217_v5 = vsub.s32 7, %v169_v4  ;;  %v196_v6 = vsub.s32 4, %v169_v4  ;;  %v210_v8 = vsub.s32 6, %v169_v4  ;;  %v203_v9 = vsub.s32 5, %v169_v4  ;;  %p390_p5 = scmp.ne.s32.totalorder %s494_s13, 3 }
  0x18   : > { %v191_v15 = vsub.s32 3, %v169_v4  ;;  %v184_v19 = vsub.s32 2, %v169_v4  ;;  %v177_v26 = vsub.s32 1, %v169_v4  ;;  %v170_v27 = vsub.s32 0, %v169_v4 }
  0x19   : > { %v163_v1 = vld [vmem:[#allocation2] sm:$0xff]  ;;  %v218_v11 = vrot.slane %v164_v7, %v217_v5  ;;  %v197_v12 = vrot.slane %v164_v7, %v196_v6  ;;  %v211_v17 = vrot.slane %v164_v7, %v210_v8  ;;  %v204_v18 = vrot.slane %v164_v7, %v203_v9  ;;  %v333_v4 = vld [vmem:[#allocation3] sm:$0xff] }
  0x1a   : > { %220 = vrot.lane.b32.xlu0 %v163_v1, %s460_s19  ;;  %213 = vrot.lane.b32.xlu1 %v163_v1, %s461_s20  ;;  %v192_v25 = vrot.slane %v164_v7, %v191_v15  ;;  %v185_v31 = vrot.slane %v164_v7, %v184_v19  ;;  %v178_v38 = vrot.slane %v164_v7, %v177_v26 }
  0x1b   : > { %v198_v22 = vmul.f32 %v197_v12, %v163_v1  ;;  %v171_v39 = vrot.slane %v164_v7, %v170_v27 }
  0x1e   : > { %206 = vrot.lane.b32.xlu0 %v163_v1, %s462_s21  ;;  %199 = vrot.lane.b32.xlu1 %v163_v1, %s463_s22 }
  0x22   : > { %187 = vrot.lane.b32.xlu1 %v163_v1, %s464_s23  ;;  %180 = vrot.lane.b32.xlu0 %v163_v1, %s465_s24 }
  0x26   : > { %173 = vrot.lane.b32.xlu1 %v163_v1, %s466_s27  ;;  %166 = vrot.lane.b32.xlu0 %v163_v1, %s467_s28 }
  0x8c   : > { %v221_v13 = vpop.permute.xlu0 %220  ;;  %v214_v14 = vpop.permute.xlu1 %213 }
  0x8d   : > { %v226_v16 = vmul.f32 %v382_v10, %v221_v13  ;;  %v219_v21 = vmul.f32 %v218_v11, %v214_v14 }
  0x8f   : > { %v231_v20 = vpack.c.bf16 %v226_v16, %v226_v16 }
  0x90   : > { %v207_v23 = vpop.permute.xlu0 %206  ;;  %v200_v24 = vpop.permute.xlu1 %199 }
  0x91   : > { %v212_v28 = vmul.f32 %v211_v17, %v207_v23  ;;  %415 = vmatprep.subr.msk.bf16.mxu0 %vm257_vm1, %v231_v20  ;;  %v259_v29 = vsel %vm257_vm1, %v231_v20, 0  ;;  %v205_v30 = vmul.f32 %v204_v18, %v200_v24 }
  0x92   : > { %402 = vmatpush3.bf16.msra.mxu0 %v259_v29 }
  0x93   : > { %v230_v32 = vpack.c.bf16 %v219_v21, %v212_v28  ;;  %v229_v33 = vpack.c.bf16 %v205_v30, %v198_v22 }
  0x94   : > { %v188_v34 = vpop.permute.xlu1 %187  ;;  %v181_v35 = vpop.permute.xlu0 %180 }
  0x95   : > { %403 = vmatprep.subr.bf16.mxu0 %v230_v32  ;;  %v193_v36 = vmul.f32 %v192_v25, %v188_v34  ;;  %v186_v37 = vmul.f32 %v185_v31, %v181_v35 }
  0x96   : > { %404 = vmatpush3.bf16.msra.mxu0 %v230_v32 }
  0x97   : > { %v228_v40 = vpack.c.bf16 %v193_v36, %v186_v37  ;;  %405 = vmatprep.subr.bf16.mxu0 %v229_v33 }
  0x98   : > { %v174_v41 = vpop.permute.xlu1 %173  ;;  %v167_v42 = vpop.permute.xlu0 %166 }
  0x99   : > { %v179_v43 = vmul.f32 %v178_v38, %v174_v41  ;;  %v172_v44 = vmul.f32 %v171_v39, %v167_v42 }
  0x9a   : > { %406 = vmatpush3.bf16.msra.mxu0 %v229_v33 }
  0x9b   : > { %v227_v45 = vpack.c.bf16 %v179_v43, %v172_v44  ;;  %407 = vmatprep.subr.bf16.mxu0 %v228_v40 }
  0x9e   : > { %408 = vmatpush3.bf16.msra.mxu0 %v228_v40 }
  0x9f   : > { %409 = vmatprep.subr.bf16.mxu0 %v227_v45 }
  0xa2   : > { %410 = vmatpush3.bf16.msra.mxu0 %v227_v45 }
  0xa5   : > { %412 = vmatmul.mubr.msk.bf16.vlgmr.msra.gmra.mxu0 %vm250_vm0, %v434_v46 }
 0x165   : > { %v413_v47 = vpop.f32.mrf.mxu0 }
 0x166   : > { %v312_v58 = vadd.f32 %v413_v47, %v234_v57 }
 0x167   : > { %v295_v49 = vpop.f32.mrf.mxu0 }
 0x168   : > { %v310_v50 = vadd.f32 %v295_v49, %v232_v48  ;;  %v389_v61 = vmul.f32 -1.442695, %v312_v58 }
 0x169   : > { %v414_v51 = vpop.f32.mrf.mxu0 }
 0x16a   : > { %v387_v53 = vmul.f32 -1.442695, %v310_v50  ;;  %v313_v63 = vadd.f32 %v414_v51, %v235_v59 }
 0x16b   : > { %v298_v54 = vpop.f32.mrf.mxu0 }
 0x16c   : > { %435 = vpow2.f32 %v387_v53  ;;  %v311_v55 = vadd.f32 %v298_v54, %v233_v52 }
 0x16e   : > { %v388_v56 = vmul.f32 -1.442695, %v311_v55 }
 0x170   : > { %437 = vpow2.f32 %v388_v56 }
 0x171   : > { %439 = vpow2.f32 %v389_v61 }
 0x179   : > { %v436_v60 = vpop.eup %435 }
 0x17a   : > { %v317_v62 = vadd.f32 1.0, %v436_v60 }
 0x17c   : > { %441 = vrcp.f32 %v317_v62 }
 0x17d   : > { %v438_v0 = vpop.eup %437  ;;  %443 = vtanh.f32 %v313_v63 }
 0x17e   : > { %v323_v1 = vadd.f32 1.0, %v438_v0  ;;  %v440_v2 = vpop.eup %439 }
 0x17f   : > { %v329_v7 = vadd.f32 1.0, %v440_v2 }
 0x180   : > { %445 = vrcp.f32 %v323_v1 }
 0x181   : > { %447 = vrcp.f32 %v329_v7 }
 0x189   : > { %v442_v3 = vpop.eup %441 }
 0x18a   : > { %v444_v5 = vpop.eup %443 }
 0x18b   : > { %v335_v8 = vmul.f32 %v444_v5, %v442_v3 }
 0x18d   : > { %v446_v6 = vpop.eup %445 }
 0x18e   : > { %v334_v9 = vmul.f32 %v446_v6, %v333_v4  ;;  %v448_v11 = vpop.eup %447 }
 0x190   : > { %v336_v10 = vadd.f32 %v335_v8, %v334_v9 }
 0x192   : > { %449 = vtanh.f32 %v336_v10  ;;  %339 = vst [vmem:[#allocation3] sm:$0xff] %v336_v10 }
 0x19e   : > { %344 = sbr.rel (%p390_p5) target bundleno = 422 (0x1a6), region = 40 }
 0x19f   : > { %v450_v12 = vpop.eup %449 }
 0x1a0   : > { %v338_v13 = vmul.f32 %v450_v12, %v448_v11 }
 0x1a2   : > { %340 = vst [vmem:[#allocation2] sm:$0xff] %v338_v13 }
 0x1a3   : > { %v345_v14 = vpack.c.bf16 %v338_v13, %v338_v13 }
 0x1a5   : > { %346 = vst [vmem:[%s534_s3] sm:$0xf] %v345_v14 }
 0x1a6 PF: > { %s13_s12 = sadd.s32 1, %s457_s12  }
 0x1a7   : > { %p10_p6 = scmp.ge.s32.totalorder %s13_s12, 6  }
 0x1a9   :  { %12 = sbr.rel (!%p10_p6) target bundleno = 1 (0x1), region = 66 }

// kernel: predic_model_forward.9
= control target key start
LH: loop header
LB: loop body
LE: loop exit
PB: predicated region body
PF: predicated region fallthrough
CT: control target
= control target key end

     0   :  { %12 = vsyncpa [#allocation4], 0  ;;  %s928_s24 = smov 0   ;;  %s1011_s0 = inlined_call_operand.vmem [shape: bf16[2,512], index: 0, kind: input, shape index: {}]   ;;  %s1012_s1 = inlined_call_operand.vmem [shape: bf16[512,64], index: 1, kind: input, shape index: {}]   ;;  %s1013_s2 = inlined_call_operand.vmem [shape: f32[1,64], index: 2, kind: input, shape index: {}]   ;;  %s1014_s3 = inlined_call_operand.vmem [shape: bf16[64,32], index: 3, kind: input, shape index: {}]   ;;  %s1015_s4 = inlined_call_operand.vmem [shape: f32[1,32], index: 4, kind: input, shape index: {}]   ;;  %s1016_s5 = inlined_call_operand.vmem [shape: bf16[32,4], index: 5, kind: input, shape index: {}]   ;;  %s1017_s6 = inlined_call_operand.vmem [shape: f32[1,4], index: 6, kind: input, shape index: {}]   ;;  %s1018_s7 = inlined_call_operand.hbm [shape: f32[2,4], index: 7, kind: output, shape index: {}]  }
   0x1 LB: > { %s934_s25 = sadd.s32 4294967295, %s881_s24   ;;  %p718_p0 = scmp.ge.s32.totalorder %s881_s24, 1  ;;  %s881_s24 = sphi %s928_s24, %s18_s24  }
   0x2   : > { %p244_p1 = scmp.lt.s32.totalorder %s881_s24, 3 }
   0x4   : > { %p245_p2 = pnand %p718_p0, %p244_p1 }
   0x5   : > { %s719_s26 = sshll.u32 (!%p245_p2), %s934_s25, 1  ;;  %s720_s27 = sshll.u32 (!%p245_p2), %s934_s25, 5 }
   0x6   : > { %248 = sbr.rel (%p245_p2) target bundleno = 683 (0x2ab), region = 48  ;;  %p276_p3 = scmp.lt.s32.totalorder (!%p245_p2), %s719_s26, 3 }
   0x7   : > { %p281_p4 = scmp.lt.s32.totalorder (!%p245_p2), %s720_s27, 63  ;;  %p722_p5 = scmp.ne.s32.totalorder (!%p245_p2), %s934_s25, 0 }
   0xb   : > { %s1020_s26 = smov (!%p276_p3, %s719_s26), 3  ;;  %s1022_s27 = smov (!%p281_p4, %s720_s27), 63 }
   0xc   : > { %s278_s30 = scalar_lea.vmem %s1011_s0, %s1020_s26  ;;  %s721_s8 = sshll.u32 %s1022_s27, 2 }
   0xd   : > { %s949_s11 = scalar_lea.vmem %s1012_s1, %s721_s8  ;;  %290 = sbr.rel (%p722_p5) target bundleno = 20 (0x14), region = 52 }
  0x12   : > { %vm291_vm0 = vcmask 517120   ;;  %v883_v0 = vmov 0.0  }
  0x13   : > { %292 = vst.msk [vmem:[#allocation2] sm:$0x3] %vm291_vm0, %v883_v0 }
  0x14 PF: > { %v825_v1 = vld [vmem:[%s949_s11 + $0x78] sm:$0xff]   ;;  %v827_v3 = vld [vmem:[%s949_s11 + $0x70] sm:$0xff]   ;;  %v829_v5 = vld [vmem:[%s949_s11 + $0x68] sm:$0xff]   ;;  %v339_v10 = vlaneseq  ;;  %v884_v14 = vmov 1966171168   ;;  %vm489_vm1 = vcmask 517120  }
  0x15   : > { %v826_v2 = vld [vmem:[%s949_s11 + $0x38] sm:$0xff]   ;;  %756 = vmatprep.subr.bf16.mxu0 %v825_v1  ;;  %v828_v4 = vld [vmem:[%s949_s11 + $0x30] sm:$0xff]   ;;  %v830_v6 = vld [vmem:[%s949_s11 + $0x28] sm:$0xff]   ;;  %v337_v15 = vunpack.c.l.s4 %v884_v14  ;;  %p740_p6 = scmp.ne.s32.totalorder %s934_s25, 1 }
  0x16   : > { %757 = vmatpush3.bf16.msra.mxu0 %v826_v2  ;;  %v831_v7 = vld [vmem:[%s949_s11 + $0x60] sm:$0xff]   ;;  %v833_v9 = vld [vmem:[%s949_s11 + $0x58] sm:$0xff]   ;;  %v835_v12 = vld [vmem:[%s949_s11 + $0x50] sm:$0xff]   ;;  %v340_v16 = vshrl.u32 %v339_v10, 7 }
  0x17   : > { %758 = vmatprep.subr.bf16.mxu0 %v827_v3  ;;  %v832_v8 = vld [vmem:[%s949_s11 + $0x20] sm:$0xff]   ;;  %v834_v11 = vld [vmem:[%s949_s11 + $0x18] sm:$0xff]   ;;  %v836_v17 = vld [vmem:[%s949_s11 + $0x10] sm:$0xff]   ;;  %v338_v19 = vunpack.c.0.s8 %v337_v15 }
  0x18   : > { %v723_v13 = vld.sshfl [vmem:[%s278_s30] sm:$0x11 pattern:$0x75316420]  ;;  %v837_v20 = vld [vmem:[%s949_s11 + $0x48] sm:$0xff]  }
  0x19   : > { %v335_v18 = vcombine.high %v723_v13, %v723_v13  ;;  %v341_v21 = vsub.s32 %v338_v19, %v340_v16  ;;  %v838_v22 = vld [vmem:[%s949_s11 + $0x8] sm:$0xff]   ;;  %v839_v24 = vld [vmem:[%s949_s11 + $0x40] sm:$0xff]  }
  0x1a   : > { %759 = vmatpush3.bf16.msra.mxu0 %v828_v4  ;;  %v840_v25 = vld [vmem:[%s949_s11] sm:$0xff]  }
  0x1b   : > { %760 = vmatprep.subr.bf16.mxu0 %v829_v5  ;;  %v349_v23 = vrot.slane %v335_v18, %v341_v21  ;;  %v342_v26 = vrot.slane %v723_v13, %v341_v21  ;;  %v293_v28 = vld [vmem:[#allocation2] sm:$0x3] }
  0x1d   : > { %480 = vmatprep.mubr.bf16.mxu0 %v349_v23 }
  0x1e   : > { %761 = vmatpush3.bf16.msra.mxu0 %v830_v6 }
  0x1f   : > { %762 = vmatprep.subr.bf16.mxu0 %v831_v7 }
  0x22   : > { %763 = vmatpush3.bf16.msra.mxu0 %v832_v8 }
  0x23   : > { %764 = vmatprep.subr.bf16.mxu0 %v833_v9 }
  0x26   : > { %765 = vmatpush3.bf16.msra.mxu0 %v834_v11 }
  0x27   : > { %766 = vmatprep.subr.bf16.mxu0 %v835_v12 }
  0x2a   : > { %767 = vmatpush3.bf16.msra.mxu0 %v836_v17 }
  0x2b   : > { %768 = vmatprep.subr.bf16.mxu0 %v837_v20 }
  0x2e   : > { %769 = vmatpush3.bf16.msra.mxu0 %v838_v22 }
  0x2f   : > { %770 = vmatprep.subr.bf16.mxu0 %v839_v24 }
  0x32   : > { %771 = vmatpush3.bf16.msra.mxu0 %v840_v25 }
  0x35   : > { %481 = vmatmul.mubr.bf16.vlgmr.msra.gmra.mxu0 %v342_v26 }
  0xf5   : > { %v772_v27 = vpop.f32.mrf.mxu0 }
  0xf7   : > { %v773_v29 = vpop.f32.mrf.mxu0 }
  0xf8   : > { %v774_v30 = vadd.f32 %v773_v29, %v772_v27  ;;  %494 = sbr.rel (%p740_p6) target bundleno = 668 (0x29c), region = 56 }
  0xf9   : > { %v775_v31 = vpop.f32.mrf.mxu0 }
  0xfa   : > { %v488_v32 = vadd.f32 %v774_v30, %v293_v28 }
  0xfb   : > { %v776_v33 = vpop.f32.mrf.mxu0 }
  0xfc   : > { %490 = vst.msk [vmem:[#allocation2] sm:$0x3] %vm489_vm1, %v488_v32 }
  0xfd   : > { %v841_v34 = vld [vmem:[%s1014_s3 + $0x18] sm:$0xff]   ;;  %v885_v35 = vmov 0.0   ;;  %v842_v36 = vld [vmem:[%s1014_s3 + $0x10] sm:$0xff]   ;;  %vm886_vm2 = vmmov 0   ;;  %v741_v38 = vld [vmem:[%s1013_s2] ss:$0 sm:$0xff] }
  0xfe   : > { %786 = vmatprep.subr.bf16.mxu0 %v885_v35  ;;  %798 = vmatprep.subr.bf16.mxu1 %v885_v35  ;;  %v843_v40 = vld [vmem:[%s1014_s3 + $0x8] sm:$0xff]   ;;  %v844_v42 = vld [vmem:[%s1014_s3] sm:$0xff]   ;;  %vm545_vm3 = vcmask 523264   ;;  %vm614_vm4 = vcmask 261120   ;;  %vm658_vm5 = vcmask 25600  }
  0xff   : > { %787 = vmatpush3.bf16.msra.mxu0 %v841_v34  ;;  %794 = vmatprep.mubr.msk.bf16.mxu0 %vm886_vm2, %v885_v35  ;;  %v845_v44 = vld [vmem:[%s1016_s5 + $0x8] sm:$0xff]   ;;  %v846_v45 = vld [vmem:[%s1016_s5] sm:$0xff]  }
 0x100   : > { %788 = vmatprep.subr.bf16.mxu0 %v885_v35  ;;  %802 = vmatprep.mubr.msk.bf16.mxu1 %vm886_vm2, %v885_v35  ;;  %v742_v46 = vld [vmem:[%s1015_s4] ss:$0 sm:$0xff] }
 0x101   : > { %799 = vmatpush3.bf16.msra.mxu1 %v845_v44  ;;  %v748_v54 = vld [vmem:[%s1017_s6] ss:$0 sm:$0xff] }
 0x102   : > { %800 = vmatprep.subr.bf16.mxu1 %v885_v35 }
 0x103   : > { %v495_v37 = vld [vmem:[#allocation2] sm:$0x3]  ;;  %789 = vmatpush3.bf16.msra.mxu0 %v842_v36 }
 0x104   : > { %v503_v39 = vadd.f32 %v741_v38, %v495_v37  ;;  %790 = vmatprep.subr.bf16.mxu0 %v885_v35 }
 0x105   : > { %801 = vmatpush3.bf16.msra.mxu1 %v846_v45 }
 0x106   : > { %v504_v41 = vmax.f32 %v503_v39, 0.0 }
 0x107   : > { %791 = vmatpush3.bf16.msra.mxu0 %v843_v40 }
 0x108   : > { %792 = vmatprep.subr.bf16.mxu0 %v885_v35  ;;  %v505_v43 = vpack.c.bf16 %v504_v41, %v504_v41 }
 0x10b   : > { %793 = vmatpush3.bf16.msra.mxu0 %v844_v42 }
 0x10e   : > { %795 = vmatmul.mubr.msk.bf16.vlgmr.msra.gmra.mxu0 %vm545_vm3, %v505_v43 }
 0x1ce   : > { %v583_v47 = vpop.f32.mrf.mxu0 }
 0x1cf   : > { %v584_v48 = vadd.f32 %v742_v46, %v583_v47 }
 0x1d0   : > { %v796_v49 = vpop.f32.mrf.mxu0 }
 0x1d1   : > { %v589_v50 = vmax.f32 %v584_v48, 0.0 }
 0x1d2   : > { %v586_v51 = vpop.f32.mrf.mxu0 }
 0x1d3   : > { %v590_v52 = vpack.c.bf16 %v589_v50, %v589_v50 }
 0x1d4   : > { %v797_v53 = vpop.f32.mrf.mxu0 }
 0x1d5   : > { %803 = vmatmul.mubr.msk.bf16.vlgmr.msra.gmra.mxu1 %vm614_vm4, %v590_v52 }
 0x295   : > { %v652_v55 = vpop.f32.mrf.mxu1 }
 0x296   : > { %v653_v56 = vadd.f32 %v748_v54, %v652_v55 }
 0x297   : > { %v804_v57 = vpop.f32.mrf.mxu1 }
 0x298   : > { %659 = vst.msk [vmem:[#allocation3] sm:$0x3] %vm658_vm5, %v653_v56 }
 0x299   : > { %v655_v58 = vpop.f32.mrf.mxu1 }
 0x29b   : > { %v805_v59 = vpop.f32.mrf.mxu1 }
 0x29c PF: > { %p810_p7 = scmp.eq.s32.totalorder %s934_s25, 1  ;;  %s887_s9 = smov [#allocation3]  }
 0x29d   : > { %s667_s10 = sshll.u32 %s887_s9, 4  ;;  %s668_s10 = int_to_ptr.vmem [resolvable:$true] %s667_s10 }
 0x29e   : > { %s847_s11 = scalar_lea.vmem %s668_s10, 32  ;;  %p854_p11 = scmp.lt.s32.totalorder %s668_s10, %s668_s10 }
 0x29f   : > { %p848_p8 = scmp.ne.s32.totalorder %s668_s10, %s847_s11  ;;  %p855_p12 = scmp.lt.s32.totalorder %s847_s11, %s847_s11 }
 0x2a1   : > { %p849_p9 = pnand %p848_p8, %p810_p7  ;;  %p856_p13 = por %p855_p12, %p854_p11 }
 0x2a3   : > { %p850_p10 = pneg %p849_p9 }
 0x2a5   : > { %p857_p0 = pnand %p856_p13, %p850_p10 }
 0x2a7   : > { %860 = shalt.err (!%p857_p0)
}
 0x2a8   : > { %807 = dma.vmem_to_hbm [thread:$0]  (%p810_p7), %s668_s10, 32, %s1018_s7, [#allocation4]  }
 0x2a9   : > { %876 = dma.done.wait (%p810_p7), [#allocation4], 32  }
 0x2aa   : > { %878 = vsyncadd (%p810_p7), [#allocation4], 4294967264 }
 0x2ab PF: > { %s18_s24 = sadd.s32 1, %s881_s24  }
 0x2ac   : > { %p15_p1 = scmp.ge.s32.totalorder %s18_s24, 4  }
 0x2ae   :  { %17 = sbr.rel (!%p15_p1) target bundleno = 1 (0x1), region = 86 }
 0x2b3   :  { %680 = vsyncpa [#allocation4], 1 }
 0x2b4   :  { %682 = vsyncpa [#allocation4 + $0x1], 1 }

</bundles_post_ra>
